<compile_context>
chip_gen: v7x
topology: tpu7x:2x2x1
jax: 0.10.0
libtpu: 0.0.40
codegen_flags: <defaults>
</compile_context>

<pallas_src>
import functools

import jax
import jax.numpy as jnp
from jax.experimental import pallas as pl
from jax.experimental.pallas import tpu as pltpu

LN_EPS = 1e-5


def _round_up(x, m):
    return ((x + m - 1) // m) * m


# ---------------------------------------------------------------------------
# Fused kernel (transposed layout: features on sublanes, batch on lanes)
# ---------------------------------------------------------------------------
def _ofenet_fused_kernel(states_ref, actions_ref, *refs, num_layers, hidden_dim,
                         hidden_pad, seg0_pad, action_pad, layernorm):
    L, H, H_pad = num_layers, hidden_dim, hidden_pad
    nblk = 2 * L

    w_refs = refs[:nblk]
    idx = nblk
    if layernorm:
        gam_ref = refs[idx]
        bet_ref = refs[idx + 1]
        idx += 2
    out_w_ref = refs[idx]          # (O_pad, sa_pad) — bias folded into "ones" col
    o_ref = refs[idx + 1]          # (O_pad, TB) output block
    feat_ref = refs[idx + 2]       # (sa_pad, TB) VMEM feature scratch

    sf_pad = seg0_pad + L * H_pad

    # Seed the scratch.  Segment offsets are sublane-tile aligned and stores
    # are full lane width (no masked partial-lane stores).
    feat_ref[0:seg0_pad, :] = states_ref[...].astype(feat_ref.dtype)
    feat_ref[sf_pad:sf_pad + action_pad, :] = actions_ref[...].astype(feat_ref.dtype)

    inv_h = 1.0 / float(H)

    def run_block(blk, k_dim, out_off):
        w = w_refs[blk][...]                          # (H_pad, k_dim)
        x = feat_ref[0:k_dim, :]                      # (k_dim, TB) prefix
        # Bias is the column of w multiplying the constant ones-row -> fused.
        h = jnp.dot(w, x, preferred_element_type=jnp.float32)   # (H_pad, TB) f32
        if layernorm:
            # One-pass statistics; padded output rows of h are exactly zero so
            # they do not perturb the sums (divide by true H, not H_pad).
            s1 = jnp.sum(h, axis=0, keepdims=True)               # (1, TB)
            s2 = jnp.sum(h * h, axis=0, keepdims=True)
            mean = s1 * inv_h
            var = s2 * inv_h - mean * mean
            inv_std = jax.lax.rsqrt(var + LN_EPS)
            gamma = gam_ref[blk]                                  # (H_pad, 1)
            beta = bet_ref[blk]                                   # (H_pad, 1)
            h = (h - mean) * inv_std * gamma + beta               # pad rows -> 0
        y = h * jax.nn.sigmoid(h)                                 # swish(beta=1)
        feat_ref[out_off:out_off + H_pad, :] = y.astype(feat_ref.dtype)

    # State blocks: prefix = [ones|states|pad, h_0..h_{i-1}].
    for i in range(L):
        off = seg0_pad + i * H_pad
        run_block(i, off, off)
    # Action blocks: prefix additionally includes [actions|pad, a_0..a_{i-1}].
    for i in range(L):
        off = sf_pad + action_pad + i * H_pad
        run_block(L + i, off, off)

    # Final linear: (O_pad, sa_pad) x (sa_pad, TB) -> lane-dense (O_pad, TB).
    o_ref[...] = jnp.dot(out_w_ref[...], feat_ref[...],
                         preferred_element_type=jnp.float32)


# ---------------------------------------------------------------------------
# Parameter init (torch layout, matches the PyTorch module)
# ---------------------------------------------------------------------------
def init_ofenet_params(key, state_dim, action_dim, output_dim, hidden_dim, num_layers):
    state_in_dims = [state_dim + i * hidden_dim for i in range(num_layers)]
    state_features_dim = state_in_dims[-1] + hidden_dim
    action_in_dims = [
        state_features_dim + action_dim + i * hidden_dim for i in range(num_layers)
    ]
    state_action_features_dim = action_in_dims[-1] + hidden_dim

    params = {"state_blocks": [], "action_blocks": []}

    def make_block(key, in_dim, out_dim):
        kw, kb = jax.random.split(key)
        bound = 1.0 / jnp.sqrt(in_dim)
        w = jax.random.uniform(kw, (in_dim, out_dim), jnp.float32, -bound, bound)
        b = jax.random.uniform(kb, (1, out_dim), jnp.float32, -bound, bound)
        gamma = jnp.ones((1, out_dim), jnp.float32)
        beta = jnp.zeros((1, out_dim), jnp.float32)
        return {"w": w, "b": b, "gamma": gamma, "beta": beta}

    keys = jax.random.split(key, 2 * num_layers + 1)
    for i in range(num_layers):
        params["state_blocks"].append(make_block(keys[i], state_in_dims[i], hidden_dim))
    for i in range(num_layers):
        params["action_blocks"].append(
            make_block(keys[num_layers + i], action_in_dims[i], hidden_dim))

    kow, kob = jax.random.split(keys[-1])
    bound = 1.0 / jnp.sqrt(state_action_features_dim)
    params["out_w"] = jax.random.uniform(
        kow, (state_action_features_dim, output_dim), jnp.float32, -bound, bound)
    params["out_b"] = jax.random.uniform(
        kob, (1, output_dim), jnp.float32, -bound, bound)
    return params


# ---------------------------------------------------------------------------
# One-time repack: torch [new, identity] prepend layout -> kernel layout
# ---------------------------------------------------------------------------
def pack_ofenet_params(params, state_dim, action_dim, *, layernorm=True,
                       param_dtype=jnp.float32):
    L = len(params["state_blocks"])
    H = params["state_blocks"][0]["w"].shape[1]
    S, A = state_dim, action_dim
    out_dim = params["out_w"].shape[1]

    pdt = jnp.dtype(param_dtype)
    align = 8 if pdt.itemsize == 4 else 16   # f32: (8,128) tiles, bf16: (16,128)
    H_pad = _round_up(H, align)
    seg0_pad = _round_up(1 + S, align)       # [ones, states, pad]
    A_pad = _round_up(A, align)
    sf_pad = seg0_pad + L * H_pad
    sa_pad = sf_pad + A_pad + L * H_pad
    O_pad = _round_up(out_dim, 8)

    row_off = {"state": 1, "action": sf_pad}
    row_size = {"state": S, "action": A}
    for j in range(L):
        row_off[f"h{j}"] = seg0_pad + j * H_pad
        row_off[f"a{j}"] = sf_pad + A_pad + j * H_pad
        row_size[f"h{j}"] = H
        row_size[f"a{j}"] = H

    def build_wt(w, b, torch_order, k_dim, n_out_pad):
        """Transpose to (H, K), permute torch rows into kernel columns, fold the
        bias into the ones-column, zero-pad everything else."""
        n_out = w.shape[1]
        wt = jnp.zeros((n_out_pad, k_dim), jnp.float32)
        wt = wt.at[:n_out, 0].set(b.reshape(-1))          # bias -> ones column
        off = 0
        for name in torch_order:
            sz = row_size[name]
            col = row_off[name]
            wt = wt.at[:n_out, col:col + sz].set(w[off:off + sz, :].T)
            off += sz
        assert off == w.shape[0], (off, w.shape)
        return wt.astype(param_dtype)

    block_ws = []
    # State block i sees [h_{i-1}, ..., h_0, states] in torch layout.
    for i in range(L):
        order = [f"h{j}" for j in range(i - 1, -1, -1)] + ["state"]
        blk = params["state_blocks"][i]
        block_ws.append(build_wt(blk["w"], blk["b"], order,
                                 seg0_pad + i * H_pad, H_pad))
    # Action block i sees [a_{i-1}..a_0, h_{L-1}..h_0, states, actions].
    for i in range(L):
        order = ([f"a{j}" for j in range(i - 1, -1, -1)]
                 + [f"h{j}" for j in range(L - 1, -1, -1)]
                 + ["state", "action"])
        blk = params["action_blocks"][i]
        block_ws.append(build_wt(blk["w"], blk["b"], order,
                                 sf_pad + A_pad + i * H_pad, H_pad))
    # Output layer sees the full torch-layout feature vector.
    order = ([f"a{j}" for j in range(L - 1, -1, -1)]
             + [f"h{j}" for j in range(L - 1, -1, -1)]
             + ["state", "action"])
    out_wt = build_wt(params["out_w"], params["out_b"], order, sa_pad, O_pad)

    packed = {"block_ws": block_ws, "out_w": out_wt}
    if layernorm:
        gam = jnp.zeros((2 * L, H_pad, 1), jnp.float32)
        bet = jnp.zeros((2 * L, H_pad, 1), jnp.float32)
        for i in range(L):
            gam = gam.at[i, :H, 0].set(params["state_blocks"][i]["gamma"].reshape(-1))
            bet = bet.at[i, :H, 0].set(params["state_blocks"][i]["beta"].reshape(-1))
            gam = gam.at[L + i, :H, 0].set(params["action_blocks"][i]["gamma"].reshape(-1))
            bet = bet.at[L + i, :H, 0].set(params["action_blocks"][i]["beta"].reshape(-1))
        packed["gamma"] = gam
        packed["beta"] = bet

    packed["config"] = {
        "num_layers": L, "state_dim": S, "action_dim": A,
        "hidden_dim": H, "hidden_pad": H_pad,
        "seg0_pad": seg0_pad, "action_pad": A_pad,
        "sf_pad": sf_pad, "sa_pad": sa_pad,
        "output_dim": out_dim, "out_pad": O_pad,
        "layernorm": layernorm, "feat_dtype": pdt,
    }
    return packed


# ---------------------------------------------------------------------------
# Fused forward
# ---------------------------------------------------------------------------
def ofenet_forward(packed, states, actions, *, batch_tile=1024):
    cfg = packed["config"]
    L = cfg["num_layers"]
    S, A = cfg["state_dim"], cfg["action_dim"]
    H_pad = cfg["hidden_pad"]
    seg0_pad, A_pad = cfg["seg0_pad"], cfg["action_pad"]
    sf_pad, sa_pad = cfg["sf_pad"], cfg["sa_pad"]
    out_dim, O_pad = cfg["output_dim"], cfg["out_pad"]
    layernorm = cfg["layernorm"]
    feat_dtype = cfg["feat_dtype"]

    assert states.shape[1] == S and actions.shape[1] == A
    batch = states.shape[0]

    # ---- batch tile (lane axis): multiple of 128, capped by batch_tile and a
    #      VMEM budget; <= ceil(batch/2) when possible so the "parallel" batch
    #      grid has >= 2 steps for the v7x megacore.
    tb_full = _round_up(batch, 128)
    tb_cap = max(128, _round_up(batch_tile, 128))
    tb_half = tb_full if tb_full <= 128 else max(128, _round_up(-(-batch // 2), 128))
    TB = min(tb_full, tb_cap, tb_half)

    weight_bytes = sum(int(w.size) * w.dtype.itemsize for w in packed["block_ws"])
    weight_bytes += int(packed["out_w"].size) * packed["out_w"].dtype.itemsize
    if layernorm:
        weight_bytes += (int(packed["gamma"].size) + int(packed["beta"].size)) * 4
    feat_bytes = jnp.dtype(feat_dtype).itemsize
    col_bytes = (sa_pad * feat_bytes            # feature scratch
                 + 2 * (seg0_pad + A_pad) * 4   # double-buffered inputs
                 + 2 * O_pad * 4)               # double-buffered output
    vmem_budget = 40 << 20                      # conservative vs v7x's 64 MiB VMEM
    tb_vmem = max(128, (int((vmem_budget - 2 * weight_bytes) // col_bytes) // 128) * 128)
    TB = min(TB, tb_vmem)

    batch_pad = _round_up(batch, TB)
    grid = (batch_pad // TB,)

    # ---- transposed, zero-padded inputs: rows = [ones, states, pad] / [actions, pad]
    st = jnp.asarray(states, jnp.float32).T             # (S, batch)
    ac = jnp.asarray(actions, jnp.float32).T             # (A, batch)
    st_pack = jnp.zeros((seg0_pad, batch_pad), jnp.float32)
    st_pack = st_pack.at[0, :batch].set(1.0)             # constant ones row (bias)
    st_pack = st_pack.at[1:1 + S, :batch].set(st)
    ac_pack = jnp.zeros((A_pad, batch_pad), jnp.float32)
    ac_pack = ac_pack.at[:A, :batch].set(ac)

    batch_map = lambda i: (0, i)
    const_map = lambda i: (0, 0)     # weights: same block every step -> no re-DMA
    const_map3 = lambda i: (0, 0, 0)

    in_specs = [
        pl.BlockSpec((seg0_pad, TB), batch_map),
        pl.BlockSpec((A_pad, TB), batch_map),
    ]
    call_args = [st_pack, ac_pack]
    for w in packed["block_ws"]:
        in_specs.append(pl.BlockSpec(w.shape, const_map))
        call_args.append(w)
    if layernorm:
        in_specs.append(pl.BlockSpec(packed["gamma"].shape, const_map3))
        in_specs.append(pl.BlockSpec(packed["beta"].shape, const_map3))
        call_args.append(packed["gamma"])
        call_args.append(packed["beta"])
    in_specs.append(pl.BlockSpec(packed["out_w"].shape, const_map))
    call_args.append(packed["out_w"])

    kernel = functools.partial(
        _ofenet_fused_kernel,
        num_layers=L, hidden_dim=cfg["hidden_dim"], hidden_pad=H_pad,
        seg0_pad=seg0_pad, action_pad=A_pad, layernorm=layernorm)

    # Advisory cost estimate so XLA schedules around the custom call sensibly.
    k_list = ([seg0_pad + i * H_pad for i in range(L)]
              + [sf_pad + A_pad + i * H_pad for i in range(L)])
    flops = 2 * batch_pad * (sum(k * H_pad for k in k_list) + sa_pad * O_pad)
    transc = batch_pad * 2 * L * (H_pad + 1)
    bytes_acc = (seg0_pad + A_pad + O_pad) * batch_pad * 4 + weight_bytes
    cost = pl.CostEstimate(flops=int(flops), transcendentals=int(transc),
                           bytes_accessed=int(bytes_acc))

    vmem_need = col_bytes * TB + 2 * weight_bytes
    vmem_limit = int(min(max(2 * vmem_need, 16 << 20), 56 << 20))

    out = pl.pallas_call(
        kernel,
        out_shape=jax.ShapeDtypeStruct((O_pad, batch_pad), jnp.float32),
        grid_spec=pltpu.PrefetchScalarGridSpec(
            num_scalar_prefetch=0,
            grid=grid,
            in_specs=in_specs,
            out_specs=pl.BlockSpec((O_pad, TB), batch_map),
            scratch_shapes=[pltpu.VMEM((sa_pad, TB), feat_dtype)],
        ),
        compiler_params=pltpu.CompilerParams(
            dimension_semantics=("parallel",),
            vmem_limit_bytes=vmem_limit,
        ),
        cost_estimate=cost,
    )(*call_args)

    return out[:out_dim, :batch].T


# ---------------------------------------------------------------------------
# Pure-JAX reference (torch layout / torch math) for sanity checking
# ---------------------------------------------------------------------------
def ofenet_forward_ref(params, states, actions, *, layernorm=True):
    def block(x, blk):
        h = x @ blk["w"] + blk["b"]
        if layernorm:
            mean = jnp.mean(h, axis=-1, keepdims=True)
            var = jnp.mean((h - mean) ** 2, axis=-1, keepdims=True)
            h = (h - mean) / jnp.sqrt(var + LN_EPS)
            h = h * blk["gamma"] + blk["beta"]
        h = h * jax.nn.sigmoid(h)
        return jnp.concatenate([h, x], axis=1)

    features = states
    for blk in params["state_blocks"]:
        features = block(features, blk)
    features = jnp.concatenate([features, actions], axis=1)
    for blk in params["action_blocks"]:
        features = block(features, blk)
    return features @ params["out_w"] + params["out_b"]


if __name__ == "__main__":
    # Small, OFENet-consistent shapes
    batch = 8
    state_dim = 16
    action_dim = 8
    output_dim = 16
    hidden_dim = 32
    num_layers = 4

    key = jax.random.PRNGKey(0)
    k_params, k_s, k_a = jax.random.split(key, 3)

    params = init_ofenet_params(
        k_params, state_dim, action_dim, output_dim, hidden_dim, num_layers)
    states = jax.random.normal(k_s, (batch, state_dim), jnp.float32)
    actions = jax.random.normal(k_a, (batch, action_dim), jnp.float32)

    packed = pack_ofenet_params(params, state_dim, action_dim, layernorm=True)

    # f32 fused path vs reference
    out = jax.block_until_ready(ofenet_forward(packed, states, actions))
    ref = ofenet_forward_ref(params, states, actions, layernorm=True)
    assert out.shape == (batch, output_dim), out.shape
    assert jnp.allclose(out, ref, atol=2e-4, rtol=2e-4), \
        float(jnp.max(jnp.abs(out - ref)))

    # Exercise a multi-step grid (ragged batch, several batch tiles).
    batch2 = 300
    k_s2, k_a2 = jax.random.split(jax.random.PRNGKey(1))
    states2 = jax.random.normal(k_s2, (batch2, state_dim), jnp.float32)
    actions2 = jax.random.normal(k_a2, (batch2, action_dim), jnp.float32)
    out2 = jax.block_until_ready(
        ofenet_forward(packed, states2, actions2, batch_tile=128))
    ref2 = ofenet_forward_ref(params, states2, actions2, layernorm=True)
    assert out2.shape == (batch2, output_dim), out2.shape
    assert jnp.allclose(out2, ref2, atol=2e-4, rtol=2e-4), \
        float(jnp.max(jnp.abs(out2 - ref2)))

    # bf16 weights + bf16 feature scratch (v5e/v6e/v7x MXU-native path);
    # accumulation, LayerNorm and swish stay f32.
    packed_bf16 = pack_ofenet_params(params, state_dim, action_dim,
                                     layernorm=True, param_dtype=jnp.bfloat16)
    out_bf16 = jax.block_until_ready(ofenet_forward(packed_bf16, states, actions))
    assert out_bf16.shape == (batch, output_dim)
    assert bool(jnp.isfinite(out_bf16).all())
    assert float(jnp.max(jnp.abs(out_bf16 - ref))) < 0.25

    print("KERNEL_OK")
</pallas_src>

<mosaic_0001>
module attributes {stable_mosaic.version = 11 : i64} {
  func.func @_ofenet_fused_kernel(%arg0: i32, %arg1: memref<24x128xf32, #tpu.memory_space<vmem>>, %arg2: memref<8x128xf32, #tpu.memory_space<vmem>>, %arg3: memref<32x24xf32, #tpu.memory_space<vmem>>, %arg4: memref<32x56xf32, #tpu.memory_space<vmem>>, %arg5: memref<32x88xf32, #tpu.memory_space<vmem>>, %arg6: memref<32x120xf32, #tpu.memory_space<vmem>>, %arg7: memref<32x160xf32, #tpu.memory_space<vmem>>, %arg8: memref<32x192xf32, #tpu.memory_space<vmem>>, %arg9: memref<32x224xf32, #tpu.memory_space<vmem>>, %arg10: memref<32x256xf32, #tpu.memory_space<vmem>>, %arg11: memref<8x32x1xf32, #tpu.memory_space<vmem>>, %arg12: memref<8x32x1xf32, #tpu.memory_space<vmem>>, %arg13: memref<16x288xf32, #tpu.memory_space<vmem>>, %arg14: memref<16x128xf32, #tpu.memory_space<vmem>>, %arg15: memref<288x128xf32, #tpu.memory_space<vmem>>) attributes {dimension_semantics = [#tpu.dimension_semantics<parallel>], iteration_bounds = array<i64: 1>, scalar_prefetch = 0 : i64, scratch_operands = 1 : i64, tpu.core_type = #tpu.core_type<tc>, window_params = [{transform_indices = @transform_0, window_bounds = array<i64: 24, 128>}, {transform_indices = @transform_1, window_bounds = array<i64: 8, 128>}, {pipeline_mode = #tpu.pipeline_mode<synchronous>, transform_indices = @transform_2, window_bounds = array<i64: 32, 24>}, {pipeline_mode = #tpu.pipeline_mode<synchronous>, transform_indices = @transform_3, window_bounds = array<i64: 32, 56>}, {pipeline_mode = #tpu.pipeline_mode<synchronous>, transform_indices = @transform_4, window_bounds = array<i64: 32, 88>}, {pipeline_mode = #tpu.pipeline_mode<synchronous>, transform_indices = @transform_5, window_bounds = array<i64: 32, 120>}, {pipeline_mode = #tpu.pipeline_mode<synchronous>, transform_indices = @transform_6, window_bounds = array<i64: 32, 160>}, {pipeline_mode = #tpu.pipeline_mode<synchronous>, transform_indices = @transform_7, window_bounds = array<i64: 32, 192>}, {pipeline_mode = #tpu.pipeline_mode<synchronous>, transform_indices = @transform_8, window_bounds = array<i64: 32, 224>}, {pipeline_mode = #tpu.pipeline_mode<synchronous>, transform_indices = @transform_9, window_bounds = array<i64: 32, 256>}, {pipeline_mode = #tpu.pipeline_mode<synchronous>, transform_indices = @transform_10, window_bounds = array<i64: 8, 32, 1>}, {pipeline_mode = #tpu.pipeline_mode<synchronous>, transform_indices = @transform_11, window_bounds = array<i64: 8, 32, 1>}, {pipeline_mode = #tpu.pipeline_mode<synchronous>, transform_indices = @transform_12, window_bounds = array<i64: 16, 288>}, {transform_indices = @transform_13, window_bounds = array<i64: 16, 128>}]} {
    %c0 = arith.constant 0 : index
    %c0_0 = arith.constant 0 : index
    %0 = vector.load %arg1[%c0, %c0_0] : memref<24x128xf32, #tpu.memory_space<vmem>>, vector<24x128xf32>
    %c0_1 = arith.constant 0 : index
    %c0_2 = arith.constant 0 : index
    %1 = vector.load %arg15[%c0_1, %c0_2] : memref<288x128xf32, #tpu.memory_space<vmem>>, vector<24x128xf32>
    tpu.vector_store %arg15[%c0_1, %c0_2], %0 {strides = array<i32>} : memref<288x128xf32, #tpu.memory_space<vmem>>, vector<24x128xf32>,
    %c0_3 = arith.constant 0 : index
    %c0_4 = arith.constant 0 : index
    %2 = vector.load %arg2[%c0_3, %c0_4] : memref<8x128xf32, #tpu.memory_space<vmem>>, vector<8x128xf32>
    %c152 = arith.constant 152 : index
    %c0_5 = arith.constant 0 : index
    %3 = vector.load %arg15[%c152, %c0_5] : memref<288x128xf32, #tpu.memory_space<vmem>>, vector<8x128xf32>
    tpu.vector_store %arg15[%c152, %c0_5], %2 {strides = array<i32>} : memref<288x128xf32, #tpu.memory_space<vmem>>, vector<8x128xf32>,
    %c0_6 = arith.constant 0 : index
    %c0_7 = arith.constant 0 : index
    %4 = vector.load %arg3[%c0_6, %c0_7] : memref<32x24xf32, #tpu.memory_space<vmem>>, vector<32x24xf32>
    %c0_8 = arith.constant 0 : index
    %c0_9 = arith.constant 0 : index
    %5 = vector.load %arg15[%c0_8, %c0_9] : memref<288x128xf32, #tpu.memory_space<vmem>>, vector<24x128xf32>
    %cst = arith.constant dense<0.000000e+00> : vector<32x128xf32>
    %6 = tpu.matmul %4, %5, %cst {dimension_numbers = #tpu.dot_dimension_numbers<[1], [0], [0], [1], [0, 0, 1, 1], [], []>} : vector<32x24xf32>, vector<24x128xf32>, vector<32x128xf32> -> vector<32x128xf32>
    %cst_10 = arith.constant dense<0.000000e+00> : vector<128xf32>
    %7 = vector.multi_reduction <add>, %6, %cst_10 [0] : vector<32x128xf32> to vector<128xf32>
    %8 = vector.shape_cast %7 : vector<128xf32> to vector<1x128xf32>
    %9 = arith.mulf %6, %6 : vector<32x128xf32>
    %cst_11 = arith.constant dense<0.000000e+00> : vector<128xf32>
    %10 = vector.multi_reduction <add>, %9, %cst_11 [0] : vector<32x128xf32> to vector<128xf32>
    %11 = vector.shape_cast %10 : vector<128xf32> to vector<1x128xf32>
    %cst_12 = arith.constant 3.125000e-02 : f32
    %12 = vector.broadcast %cst_12 : f32 to vector<1x128xf32>
    %13 = arith.mulf %8, %12 : vector<1x128xf32>
    %cst_13 = arith.constant 3.125000e-02 : f32
    %14 = vector.broadcast %cst_13 : f32 to vector<1x128xf32>
    %15 = arith.mulf %11, %14 : vector<1x128xf32>
    %16 = arith.mulf %13, %13 : vector<1x128xf32>
    %17 = arith.subf %15, %16 : vector<1x128xf32>
    %cst_14 = arith.constant 9.99999974E-6 : f32
    %18 = vector.broadcast %cst_14 : f32 to vector<1x128xf32>
    %19 = arith.addf %17, %18 : vector<1x128xf32>
    %20 = math.rsqrt %19 : vector<1x128xf32>
    %c0_15 = arith.constant 0 : index
    %c0_16 = arith.constant 0 : index
    %c0_17 = arith.constant 0 : index
    %21 = vector.load %arg11[%c0_15, %c0_16, %c0_17] : memref<8x32x1xf32, #tpu.memory_space<vmem>>, vector<1x32x1xf32>
    %22 = vector.shape_cast %21 : vector<1x32x1xf32> to vector<32x1xf32>
    %c0_18 = arith.constant 0 : index
    %c0_19 = arith.constant 0 : index
    %c0_20 = arith.constant 0 : index
    %23 = vector.load %arg12[%c0_18, %c0_19, %c0_20] : memref<8x32x1xf32, #tpu.memory_space<vmem>>, vector<1x32x1xf32>
    %24 = vector.shape_cast %23 : vector<1x32x1xf32> to vector<32x1xf32>
    %25 = vector.broadcast %13 : vector<1x128xf32> to vector<32x128xf32>
    %26 = arith.subf %6, %25 : vector<32x128xf32>
    %27 = vector.broadcast %20 : vector<1x128xf32> to vector<32x128xf32>
    %28 = arith.mulf %26, %27 : vector<32x128xf32>
    %29 = vector.broadcast %22 : vector<32x1xf32> to vector<32x128xf32>
    %30 = arith.mulf %28, %29 : vector<32x128xf32>
    %31 = vector.broadcast %24 : vector<32x1xf32> to vector<32x128xf32>
    %32 = arith.addf %30, %31 : vector<32x128xf32>
    %33 = arith.negf %32 : vector<32x128xf32>
    %34 = math.exp %33 : vector<32x128xf32>
    %cst_21 = arith.constant 1.000000e+00 : f32
    %35 = vector.broadcast %cst_21 : f32 to vector<32x128xf32>
    %36 = arith.addf %35, %34 : vector<32x128xf32>
    %37 = arith.divf %35, %36 : vector<32x128xf32>
    %38 = arith.mulf %32, %37 : vector<32x128xf32>
    %c24 = arith.constant 24 : index
    %c0_22 = arith.constant 0 : index
    %39 = vector.load %arg15[%c24, %c0_22] : memref<288x128xf32, #tpu.memory_space<vmem>>, vector<32x128xf32>
    tpu.vector_store %arg15[%c24, %c0_22], %38 {strides = array<i32>} : memref<288x128xf32, #tpu.memory_space<vmem>>, vector<32x128xf32>,
    %c0_23 = arith.constant 0 : index
    %c0_24 = arith.constant 0 : index
    %40 = vector.load %arg4[%c0_23, %c0_24] : memref<32x56xf32, #tpu.memory_space<vmem>>, vector<32x56xf32>
    %c0_25 = arith.constant 0 : index
    %c0_26 = arith.constant 0 : index
    %41 = vector.load %arg15[%c0_25, %c0_26] : memref<288x128xf32, #tpu.memory_space<vmem>>, vector<56x128xf32>
    %cst_27 = arith.constant dense<0.000000e+00> : vector<32x128xf32>
    %42 = tpu.matmul %40, %41, %cst_27 {dimension_numbers = #tpu.dot_dimension_numbers<[1], [0], [0], [1], [0, 0, 1, 1], [], []>} : vector<32x56xf32>, vector<56x128xf32>, vector<32x128xf32> -> vector<32x128xf32>
    %cst_28 = arith.constant dense<0.000000e+00> : vector<128xf32>
    %43 = vector.multi_reduction <add>, %42, %cst_28 [0] : vector<32x128xf32> to vector<128xf32>
    %44 = vector.shape_cast %43 : vector<128xf32> to vector<1x128xf32>
    %45 = arith.mulf %42, %42 : vector<32x128xf32>
    %cst_29 = arith.constant dense<0.000000e+00> : vector<128xf32>
    %46 = vector.multi_reduction <add>, %45, %cst_29 [0] : vector<32x128xf32> to vector<128xf32>
    %47 = vector.shape_cast %46 : vector<128xf32> to vector<1x128xf32>
    %cst_30 = arith.constant 3.125000e-02 : f32
    %48 = vector.broadcast %cst_30 : f32 to vector<1x128xf32>
    %49 = arith.mulf %44, %48 : vector<1x128xf32>
    %cst_31 = arith.constant 3.125000e-02 : f32
    %50 = vector.broadcast %cst_31 : f32 to vector<1x128xf32>
    %51 = arith.mulf %47, %50 : vector<1x128xf32>
    %52 = arith.mulf %49, %49 : vector<1x128xf32>
    %53 = arith.subf %51, %52 : vector<1x128xf32>
    %cst_32 = arith.constant 9.99999974E-6 : f32
    %54 = vector.broadcast %cst_32 : f32 to vector<1x128xf32>
    %55 = arith.addf %53, %54 : vector<1x128xf32>
    %56 = math.rsqrt %55 : vector<1x128xf32>
    %c1 = arith.constant 1 : index
    %c0_33 = arith.constant 0 : index
    %c0_34 = arith.constant 0 : index
    %57 = vector.load %arg11[%c1, %c0_33, %c0_34] : memref<8x32x1xf32, #tpu.memory_space<vmem>>, vector<1x32x1xf32>
    %58 = vector.shape_cast %57 : vector<1x32x1xf32> to vector<32x1xf32>
    %c1_35 = arith.constant 1 : index
    %c0_36 = arith.constant 0 : index
    %c0_37 = arith.constant 0 : index
    %59 = vector.load %arg12[%c1_35, %c0_36, %c0_37] : memref<8x32x1xf32, #tpu.memory_space<vmem>>, vector<1x32x1xf32>
    %60 = vector.shape_cast %59 : vector<1x32x1xf32> to vector<32x1xf32>
    %61 = vector.broadcast %49 : vector<1x128xf32> to vector<32x128xf32>
    %62 = arith.subf %42, %61 : vector<32x128xf32>
    %63 = vector.broadcast %56 : vector<1x128xf32> to vector<32x128xf32>
    %64 = arith.mulf %62, %63 : vector<32x128xf32>
    %65 = vector.broadcast %58 : vector<32x1xf32> to vector<32x128xf32>
    %66 = arith.mulf %64, %65 : vector<32x128xf32>
    %67 = vector.broadcast %60 : vector<32x1xf32> to vector<32x128xf32>
    %68 = arith.addf %66, %67 : vector<32x128xf32>
    %69 = arith.negf %68 : vector<32x128xf32>
    %70 = math.exp %69 : vector<32x128xf32>
    %cst_38 = arith.constant 1.000000e+00 : f32
    %71 = vector.broadcast %cst_38 : f32 to vector<32x128xf32>
    %72 = arith.addf %71, %70 : vector<32x128xf32>
    %73 = arith.divf %71, %72 : vector<32x128xf32>
    %74 = arith.mulf %68, %73 : vector<32x128xf32>
    %c56 = arith.constant 56 : index
    %c0_39 = arith.constant 0 : index
    %75 = vector.load %arg15[%c56, %c0_39] : memref<288x128xf32, #tpu.memory_space<vmem>>, vector<32x128xf32>
    tpu.vector_store %arg15[%c56, %c0_39], %74 {strides = array<i32>} : memref<288x128xf32, #tpu.memory_space<vmem>>, vector<32x128xf32>,
    %c0_40 = arith.constant 0 : index
    %c0_41 = arith.constant 0 : index
    %76 = vector.load %arg5[%c0_40, %c0_41] : memref<32x88xf32, #tpu.memory_space<vmem>>, vector<32x88xf32>
    %c0_42 = arith.constant 0 : index
    %c0_43 = arith.constant 0 : index
    %77 = vector.load %arg15[%c0_42, %c0_43] : memref<288x128xf32, #tpu.memory_space<vmem>>, vector<88x128xf32>
    %cst_44 = arith.constant dense<0.000000e+00> : vector<32x128xf32>
    %78 = tpu.matmul %76, %77, %cst_44 {dimension_numbers = #tpu.dot_dimension_numbers<[1], [0], [0], [1], [0, 0, 1, 1], [], []>} : vector<32x88xf32>, vector<88x128xf32>, vector<32x128xf32> -> vector<32x128xf32>
    %cst_45 = arith.constant dense<0.000000e+00> : vector<128xf32>
    %79 = vector.multi_reduction <add>, %78, %cst_45 [0] : vector<32x128xf32> to vector<128xf32>
    %80 = vector.shape_cast %79 : vector<128xf32> to vector<1x128xf32>
    %81 = arith.mulf %78, %78 : vector<32x128xf32>
    %cst_46 = arith.constant dense<0.000000e+00> : vector<128xf32>
    %82 = vector.multi_reduction <add>, %81, %cst_46 [0] : vector<32x128xf32> to vector<128xf32>
    %83 = vector.shape_cast %82 : vector<128xf32> to vector<1x128xf32>
    %cst_47 = arith.constant 3.125000e-02 : f32
    %84 = vector.broadcast %cst_47 : f32 to vector<1x128xf32>
    %85 = arith.mulf %80, %84 : vector<1x128xf32>
    %cst_48 = arith.constant 3.125000e-02 : f32
    %86 = vector.broadcast %cst_48 : f32 to vector<1x128xf32>
    %87 = arith.mulf %83, %86 : vector<1x128xf32>
    %88 = arith.mulf %85, %85 : vector<1x128xf32>
    %89 = arith.subf %87, %88 : vector<1x128xf32>
    %cst_49 = arith.constant 9.99999974E-6 : f32
    %90 = vector.broadcast %cst_49 : f32 to vector<1x128xf32>
    %91 = arith.addf %89, %90 : vector<1x128xf32>
    %92 = math.rsqrt %91 : vector<1x128xf32>
    %c2 = arith.constant 2 : index
    %c0_50 = arith.constant 0 : index
    %c0_51 = arith.constant 0 : index
    %93 = vector.load %arg11[%c2, %c0_50, %c0_51] : memref<8x32x1xf32, #tpu.memory_space<vmem>>, vector<1x32x1xf32>
    %94 = vector.shape_cast %93 : vector<1x32x1xf32> to vector<32x1xf32>
    %c2_52 = arith.constant 2 : index
    %c0_53 = arith.constant 0 : index
    %c0_54 = arith.constant 0 : index
    %95 = vector.load %arg12[%c2_52, %c0_53, %c0_54] : memref<8x32x1xf32, #tpu.memory_space<vmem>>, vector<1x32x1xf32>
    %96 = vector.shape_cast %95 : vector<1x32x1xf32> to vector<32x1xf32>
    %97 = vector.broadcast %85 : vector<1x128xf32> to vector<32x128xf32>
    %98 = arith.subf %78, %97 : vector<32x128xf32>
    %99 = vector.broadcast %92 : vector<1x128xf32> to vector<32x128xf32>
    %100 = arith.mulf %98, %99 : vector<32x128xf32>
    %101 = vector.broadcast %94 : vector<32x1xf32> to vector<32x128xf32>
    %102 = arith.mulf %100, %101 : vector<32x128xf32>
    %103 = vector.broadcast %96 : vector<32x1xf32> to vector<32x128xf32>
    %104 = arith.addf %102, %103 : vector<32x128xf32>
    %105 = arith.negf %104 : vector<32x128xf32>
    %106 = math.exp %105 : vector<32x128xf32>
    %cst_55 = arith.constant 1.000000e+00 : f32
    %107 = vector.broadcast %cst_55 : f32 to vector<32x128xf32>
    %108 = arith.addf %107, %106 : vector<32x128xf32>
    %109 = arith.divf %107, %108 : vector<32x128xf32>
    %110 = arith.mulf %104, %109 : vector<32x128xf32>
    %c88 = arith.constant 88 : index
    %c0_56 = arith.constant 0 : index
    %111 = vector.load %arg15[%c88, %c0_56] : memref<288x128xf32, #tpu.memory_space<vmem>>, vector<32x128xf32>
    tpu.vector_store %arg15[%c88, %c0_56], %110 {strides = array<i32>} : memref<288x128xf32, #tpu.memory_space<vmem>>, vector<32x128xf32>,
    %c0_57 = arith.constant 0 : index
    %c0_58 = arith.constant 0 : index
    %112 = vector.load %arg6[%c0_57, %c0_58] : memref<32x120xf32, #tpu.memory_space<vmem>>, vector<32x120xf32>
    %c0_59 = arith.constant 0 : index
    %c0_60 = arith.constant 0 : index
    %113 = vector.load %arg15[%c0_59, %c0_60] : memref<288x128xf32, #tpu.memory_space<vmem>>, vector<120x128xf32>
    %cst_61 = arith.constant dense<0.000000e+00> : vector<32x128xf32>
    %114 = tpu.matmul %112, %113, %cst_61 {dimension_numbers = #tpu.dot_dimension_numbers<[1], [0], [0], [1], [0, 0, 1, 1], [], []>} : vector<32x120xf32>, vector<120x128xf32>, vector<32x128xf32> -> vector<32x128xf32>
    %cst_62 = arith.constant dense<0.000000e+00> : vector<128xf32>
    %115 = vector.multi_reduction <add>, %114, %cst_62 [0] : vector<32x128xf32> to vector<128xf32>
    %116 = vector.shape_cast %115 : vector<128xf32> to vector<1x128xf32>
    %117 = arith.mulf %114, %114 : vector<32x128xf32>
    %cst_63 = arith.constant dense<0.000000e+00> : vector<128xf32>
    %118 = vector.multi_reduction <add>, %117, %cst_63 [0] : vector<32x128xf32> to vector<128xf32>
    %119 = vector.shape_cast %118 : vector<128xf32> to vector<1x128xf32>
    %cst_64 = arith.constant 3.125000e-02 : f32
    %120 = vector.broadcast %cst_64 : f32 to vector<1x128xf32>
    %121 = arith.mulf %116, %120 : vector<1x128xf32>
    %cst_65 = arith.constant 3.125000e-02 : f32
    %122 = vector.broadcast %cst_65 : f32 to vector<1x128xf32>
    %123 = arith.mulf %119, %122 : vector<1x128xf32>
    %124 = arith.mulf %121, %121 : vector<1x128xf32>
    %125 = arith.subf %123, %124 : vector<1x128xf32>
    %cst_66 = arith.constant 9.99999974E-6 : f32
    %126 = vector.broadcast %cst_66 : f32 to vector<1x128xf32>
    %127 = arith.addf %125, %126 : vector<1x128xf32>
    %128 = math.rsqrt %127 : vector<1x128xf32>
    %c3 = arith.constant 3 : index
    %c0_67 = arith.constant 0 : index
    %c0_68 = arith.constant 0 : index
    %129 = vector.load %arg11[%c3, %c0_67, %c0_68] : memref<8x32x1xf32, #tpu.memory_space<vmem>>, vector<1x32x1xf32>
    %130 = vector.shape_cast %129 : vector<1x32x1xf32> to vector<32x1xf32>
    %c3_69 = arith.constant 3 : index
    %c0_70 = arith.constant 0 : index
    %c0_71 = arith.constant 0 : index
    %131 = vector.load %arg12[%c3_69, %c0_70, %c0_71] : memref<8x32x1xf32, #tpu.memory_space<vmem>>, vector<1x32x1xf32>
    %132 = vector.shape_cast %131 : vector<1x32x1xf32> to vector<32x1xf32>
    %133 = vector.broadcast %121 : vector<1x128xf32> to vector<32x128xf32>
    %134 = arith.subf %114, %133 : vector<32x128xf32>
    %135 = vector.broadcast %128 : vector<1x128xf32> to vector<32x128xf32>
    %136 = arith.mulf %134, %135 : vector<32x128xf32>
    %137 = vector.broadcast %130 : vector<32x1xf32> to vector<32x128xf32>
    %138 = arith.mulf %136, %137 : vector<32x128xf32>
    %139 = vector.broadcast %132 : vector<32x1xf32> to vector<32x128xf32>
    %140 = arith.addf %138, %139 : vector<32x128xf32>
    %141 = arith.negf %140 : vector<32x128xf32>
    %142 = math.exp %141 : vector<32x128xf32>
    %cst_72 = arith.constant 1.000000e+00 : f32
    %143 = vector.broadcast %cst_72 : f32 to vector<32x128xf32>
    %144 = arith.addf %143, %142 : vector<32x128xf32>
    %145 = arith.divf %143, %144 : vector<32x128xf32>
    %146 = arith.mulf %140, %145 : vector<32x128xf32>
    %c120 = arith.constant 120 : index
    %c0_73 = arith.constant 0 : index
    %147 = vector.load %arg15[%c120, %c0_73] : memref<288x128xf32, #tpu.memory_space<vmem>>, vector<32x128xf32>
    tpu.vector_store %arg15[%c120, %c0_73], %146 {strides = array<i32>} : memref<288x128xf32, #tpu.memory_space<vmem>>, vector<32x128xf32>,
    %c0_74 = arith.constant 0 : index
    %c0_75 = arith.constant 0 : index
    %148 = vector.load %arg7[%c0_74, %c0_75] : memref<32x160xf32, #tpu.memory_space<vmem>>, vector<32x160xf32>
    %c0_76 = arith.constant 0 : index
    %c0_77 = arith.constant 0 : index
    %149 = vector.load %arg15[%c0_76, %c0_77] : memref<288x128xf32, #tpu.memory_space<vmem>>, vector<160x128xf32>
    %cst_78 = arith.constant dense<0.000000e+00> : vector<32x128xf32>
    %150 = tpu.matmul %148, %149, %cst_78 {dimension_numbers = #tpu.dot_dimension_numbers<[1], [0], [0], [1], [0, 0, 1, 1], [], []>} : vector<32x160xf32>, vector<160x128xf32>, vector<32x128xf32> -> vector<32x128xf32>
    %cst_79 = arith.constant dense<0.000000e+00> : vector<128xf32>
    %151 = vector.multi_reduction <add>, %150, %cst_79 [0] : vector<32x128xf32> to vector<128xf32>
    %152 = vector.shape_cast %151 : vector<128xf32> to vector<1x128xf32>
    %153 = arith.mulf %150, %150 : vector<32x128xf32>
    %cst_80 = arith.constant dense<0.000000e+00> : vector<128xf32>
    %154 = vector.multi_reduction <add>, %153, %cst_80 [0] : vector<32x128xf32> to vector<128xf32>
    %155 = vector.shape_cast %154 : vector<128xf32> to vector<1x128xf32>
    %cst_81 = arith.constant 3.125000e-02 : f32
    %156 = vector.broadcast %cst_81 : f32 to vector<1x128xf32>
    %157 = arith.mulf %152, %156 : vector<1x128xf32>
    %cst_82 = arith.constant 3.125000e-02 : f32
    %158 = vector.broadcast %cst_82 : f32 to vector<1x128xf32>
    %159 = arith.mulf %155, %158 : vector<1x128xf32>
    %160 = arith.mulf %157, %157 : vector<1x128xf32>
    %161 = arith.subf %159, %160 : vector<1x128xf32>
    %cst_83 = arith.constant 9.99999974E-6 : f32
    %162 = vector.broadcast %cst_83 : f32 to vector<1x128xf32>
    %163 = arith.addf %161, %162 : vector<1x128xf32>
    %164 = math.rsqrt %163 : vector<1x128xf32>
    %c4 = arith.constant 4 : index
    %c0_84 = arith.constant 0 : index
    %c0_85 = arith.constant 0 : index
    %165 = vector.load %arg11[%c4, %c0_84, %c0_85] : memref<8x32x1xf32, #tpu.memory_space<vmem>>, vector<1x32x1xf32>
    %166 = vector.shape_cast %165 : vector<1x32x1xf32> to vector<32x1xf32>
    %c4_86 = arith.constant 4 : index
    %c0_87 = arith.constant 0 : index
    %c0_88 = arith.constant 0 : index
    %167 = vector.load %arg12[%c4_86, %c0_87, %c0_88] : memref<8x32x1xf32, #tpu.memory_space<vmem>>, vector<1x32x1xf32>
    %168 = vector.shape_cast %167 : vector<1x32x1xf32> to vector<32x1xf32>
    %169 = vector.broadcast %157 : vector<1x128xf32> to vector<32x128xf32>
    %170 = arith.subf %150, %169 : vector<32x128xf32>
    %171 = vector.broadcast %164 : vector<1x128xf32> to vector<32x128xf32>
    %172 = arith.mulf %170, %171 : vector<32x128xf32>
    %173 = vector.broadcast %166 : vector<32x1xf32> to vector<32x128xf32>
    %174 = arith.mulf %172, %173 : vector<32x128xf32>
    %175 = vector.broadcast %168 : vector<32x1xf32> to vector<32x128xf32>
    %176 = arith.addf %174, %175 : vector<32x128xf32>
    %177 = arith.negf %176 : vector<32x128xf32>
    %178 = math.exp %177 : vector<32x128xf32>
    %cst_89 = arith.constant 1.000000e+00 : f32
    %179 = vector.broadcast %cst_89 : f32 to vector<32x128xf32>
    %180 = arith.addf %179, %178 : vector<32x128xf32>
    %181 = arith.divf %179, %180 : vector<32x128xf32>
    %182 = arith.mulf %176, %181 : vector<32x128xf32>
    %c160 = arith.constant 160 : index
    %c0_90 = arith.constant 0 : index
    %183 = vector.load %arg15[%c160, %c0_90] : memref<288x128xf32, #tpu.memory_space<vmem>>, vector<32x128xf32>
    tpu.vector_store %arg15[%c160, %c0_90], %182 {strides = array<i32>} : memref<288x128xf32, #tpu.memory_space<vmem>>, vector<32x128xf32>,
    %c0_91 = arith.constant 0 : index
    %c0_92 = arith.constant 0 : index
    %184 = vector.load %arg8[%c0_91, %c0_92] : memref<32x192xf32, #tpu.memory_space<vmem>>, vector<32x192xf32>
    %c0_93 = arith.constant 0 : index
    %c0_94 = arith.constant 0 : index
    %185 = vector.load %arg15[%c0_93, %c0_94] : memref<288x128xf32, #tpu.memory_space<vmem>>, vector<192x128xf32>
    %cst_95 = arith.constant dense<0.000000e+00> : vector<32x128xf32>
    %186 = tpu.matmul %184, %185, %cst_95 {dimension_numbers = #tpu.dot_dimension_numbers<[1], [0], [0], [1], [0, 0, 1, 1], [], []>} : vector<32x192xf32>, vector<192x128xf32>, vector<32x128xf32> -> vector<32x128xf32>
    %cst_96 = arith.constant dense<0.000000e+00> : vector<128xf32>
    %187 = vector.multi_reduction <add>, %186, %cst_96 [0] : vector<32x128xf32> to vector<128xf32>
    %188 = vector.shape_cast %187 : vector<128xf32> to vector<1x128xf32>
    %189 = arith.mulf %186, %186 : vector<32x128xf32>
    %cst_97 = arith.constant dense<0.000000e+00> : vector<128xf32>
    %190 = vector.multi_reduction <add>, %189, %cst_97 [0] : vector<32x128xf32> to vector<128xf32>
    %191 = vector.shape_cast %190 : vector<128xf32> to vector<1x128xf32>
    %cst_98 = arith.constant 3.125000e-02 : f32
    %192 = vector.broadcast %cst_98 : f32 to vector<1x128xf32>
    %193 = arith.mulf %188, %192 : vector<1x128xf32>
    %cst_99 = arith.constant 3.125000e-02 : f32
    %194 = vector.broadcast %cst_99 : f32 to vector<1x128xf32>
    %195 = arith.mulf %191, %194 : vector<1x128xf32>
    %196 = arith.mulf %193, %193 : vector<1x128xf32>
    %197 = arith.subf %195, %196 : vector<1x128xf32>
    %cst_100 = arith.constant 9.99999974E-6 : f32
    %198 = vector.broadcast %cst_100 : f32 to vector<1x128xf32>
    %199 = arith.addf %197, %198 : vector<1x128xf32>
    %200 = math.rsqrt %199 : vector<1x128xf32>
    %c5 = arith.constant 5 : index
    %c0_101 = arith.constant 0 : index
    %c0_102 = arith.constant 0 : index
    %201 = vector.load %arg11[%c5, %c0_101, %c0_102] : memref<8x32x1xf32, #tpu.memory_space<vmem>>, vector<1x32x1xf32>
    %202 = vector.shape_cast %201 : vector<1x32x1xf32> to vector<32x1xf32>
    %c5_103 = arith.constant 5 : index
    %c0_104 = arith.constant 0 : index
    %c0_105 = arith.constant 0 : index
    %203 = vector.load %arg12[%c5_103, %c0_104, %c0_105] : memref<8x32x1xf32, #tpu.memory_space<vmem>>, vector<1x32x1xf32>
    %204 = vector.shape_cast %203 : vector<1x32x1xf32> to vector<32x1xf32>
    %205 = vector.broadcast %193 : vector<1x128xf32> to vector<32x128xf32>
    %206 = arith.subf %186, %205 : vector<32x128xf32>
    %207 = vector.broadcast %200 : vector<1x128xf32> to vector<32x128xf32>
    %208 = arith.mulf %206, %207 : vector<32x128xf32>
    %209 = vector.broadcast %202 : vector<32x1xf32> to vector<32x128xf32>
    %210 = arith.mulf %208, %209 : vector<32x128xf32>
    %211 = vector.broadcast %204 : vector<32x1xf32> to vector<32x128xf32>
    %212 = arith.addf %210, %211 : vector<32x128xf32>
    %213 = arith.negf %212 : vector<32x128xf32>
    %214 = math.exp %213 : vector<32x128xf32>
    %cst_106 = arith.constant 1.000000e+00 : f32
    %215 = vector.broadcast %cst_106 : f32 to vector<32x128xf32>
    %216 = arith.addf %215, %214 : vector<32x128xf32>
    %217 = arith.divf %215, %216 : vector<32x128xf32>
    %218 = arith.mulf %212, %217 : vector<32x128xf32>
    %c192 = arith.constant 192 : index
    %c0_107 = arith.constant 0 : index
    %219 = vector.load %arg15[%c192, %c0_107] : memref<288x128xf32, #tpu.memory_space<vmem>>, vector<32x128xf32>
    tpu.vector_store %arg15[%c192, %c0_107], %218 {strides = array<i32>} : memref<288x128xf32, #tpu.memory_space<vmem>>, vector<32x128xf32>,
    %c0_108 = arith.constant 0 : index
    %c0_109 = arith.constant 0 : index
    %220 = vector.load %arg9[%c0_108, %c0_109] : memref<32x224xf32, #tpu.memory_space<vmem>>, vector<32x224xf32>
    %c0_110 = arith.constant 0 : index
    %c0_111 = arith.constant 0 : index
    %221 = vector.load %arg15[%c0_110, %c0_111] : memref<288x128xf32, #tpu.memory_space<vmem>>, vector<224x128xf32>
    %cst_112 = arith.constant dense<0.000000e+00> : vector<32x128xf32>
    %222 = tpu.matmul %220, %221, %cst_112 {dimension_numbers = #tpu.dot_dimension_numbers<[1], [0], [0], [1], [0, 0, 1, 1], [], []>} : vector<32x224xf32>, vector<224x128xf32>, vector<32x128xf32> -> vector<32x128xf32>
    %cst_113 = arith.constant dense<0.000000e+00> : vector<128xf32>
    %223 = vector.multi_reduction <add>, %222, %cst_113 [0] : vector<32x128xf32> to vector<128xf32>
    %224 = vector.shape_cast %223 : vector<128xf32> to vector<1x128xf32>
    %225 = arith.mulf %222, %222 : vector<32x128xf32>
    %cst_114 = arith.constant dense<0.000000e+00> : vector<128xf32>
    %226 = vector.multi_reduction <add>, %225, %cst_114 [0] : vector<32x128xf32> to vector<128xf32>
    %227 = vector.shape_cast %226 : vector<128xf32> to vector<1x128xf32>
    %cst_115 = arith.constant 3.125000e-02 : f32
    %228 = vector.broadcast %cst_115 : f32 to vector<1x128xf32>
    %229 = arith.mulf %224, %228 : vector<1x128xf32>
    %cst_116 = arith.constant 3.125000e-02 : f32
    %230 = vector.broadcast %cst_116 : f32 to vector<1x128xf32>
    %231 = arith.mulf %227, %230 : vector<1x128xf32>
    %232 = arith.mulf %229, %229 : vector<1x128xf32>
    %233 = arith.subf %231, %232 : vector<1x128xf32>
    %cst_117 = arith.constant 9.99999974E-6 : f32
    %234 = vector.broadcast %cst_117 : f32 to vector<1x128xf32>
    %235 = arith.addf %233, %234 : vector<1x128xf32>
    %236 = math.rsqrt %235 : vector<1x128xf32>
    %c6 = arith.constant 6 : index
    %c0_118 = arith.constant 0 : index
    %c0_119 = arith.constant 0 : index
    %237 = vector.load %arg11[%c6, %c0_118, %c0_119] : memref<8x32x1xf32, #tpu.memory_space<vmem>>, vector<1x32x1xf32>
    %238 = vector.shape_cast %237 : vector<1x32x1xf32> to vector<32x1xf32>
    %c6_120 = arith.constant 6 : index
    %c0_121 = arith.constant 0 : index
    %c0_122 = arith.constant 0 : index
    %239 = vector.load %arg12[%c6_120, %c0_121, %c0_122] : memref<8x32x1xf32, #tpu.memory_space<vmem>>, vector<1x32x1xf32>
    %240 = vector.shape_cast %239 : vector<1x32x1xf32> to vector<32x1xf32>
    %241 = vector.broadcast %229 : vector<1x128xf32> to vector<32x128xf32>
    %242 = arith.subf %222, %241 : vector<32x128xf32>
    %243 = vector.broadcast %236 : vector<1x128xf32> to vector<32x128xf32>
    %244 = arith.mulf %242, %243 : vector<32x128xf32>
    %245 = vector.broadcast %238 : vector<32x1xf32> to vector<32x128xf32>
    %246 = arith.mulf %244, %245 : vector<32x128xf32>
    %247 = vector.broadcast %240 : vector<32x1xf32> to vector<32x128xf32>
    %248 = arith.addf %246, %247 : vector<32x128xf32>
    %249 = arith.negf %248 : vector<32x128xf32>
    %250 = math.exp %249 : vector<32x128xf32>
    %cst_123 = arith.constant 1.000000e+00 : f32
    %251 = vector.broadcast %cst_123 : f32 to vector<32x128xf32>
    %252 = arith.addf %251, %250 : vector<32x128xf32>
    %253 = arith.divf %251, %252 : vector<32x128xf32>
    %254 = arith.mulf %248, %253 : vector<32x128xf32>
    %c224 = arith.constant 224 : index
    %c0_124 = arith.constant 0 : index
    %255 = vector.load %arg15[%c224, %c0_124] : memref<288x128xf32, #tpu.memory_space<vmem>>, vector<32x128xf32>
    tpu.vector_store %arg15[%c224, %c0_124], %254 {strides = array<i32>} : memref<288x128xf32, #tpu.memory_space<vmem>>, vector<32x128xf32>,
    %c0_125 = arith.constant 0 : index
    %c0_126 = arith.constant 0 : index
    %256 = vector.load %arg10[%c0_125, %c0_126] : memref<32x256xf32, #tpu.memory_space<vmem>>, vector<32x256xf32>
    %c0_127 = arith.constant 0 : index
    %c0_128 = arith.constant 0 : index
    %257 = vector.load %arg15[%c0_127, %c0_128] : memref<288x128xf32, #tpu.memory_space<vmem>>, vector<256x128xf32>
    %cst_129 = arith.constant dense<0.000000e+00> : vector<32x128xf32>
    %258 = tpu.matmul %256, %257, %cst_129 {dimension_numbers = #tpu.dot_dimension_numbers<[1], [0], [0], [1], [0, 0, 1, 1], [], []>} : vector<32x256xf32>, vector<256x128xf32>, vector<32x128xf32> -> vector<32x128xf32>
    %cst_130 = arith.constant dense<0.000000e+00> : vector<128xf32>
    %259 = vector.multi_reduction <add>, %258, %cst_130 [0] : vector<32x128xf32> to vector<128xf32>
    %260 = vector.shape_cast %259 : vector<128xf32> to vector<1x128xf32>
    %261 = arith.mulf %258, %258 : vector<32x128xf32>
    %cst_131 = arith.constant dense<0.000000e+00> : vector<128xf32>
    %262 = vector.multi_reduction <add>, %261, %cst_131 [0] : vector<32x128xf32> to vector<128xf32>
    %263 = vector.shape_cast %262 : vector<128xf32> to vector<1x128xf32>
    %cst_132 = arith.constant 3.125000e-02 : f32
    %264 = vector.broadcast %cst_132 : f32 to vector<1x128xf32>
    %265 = arith.mulf %260, %264 : vector<1x128xf32>
    %cst_133 = arith.constant 3.125000e-02 : f32
    %266 = vector.broadcast %cst_133 : f32 to vector<1x128xf32>
    %267 = arith.mulf %263, %266 : vector<1x128xf32>
    %268 = arith.mulf %265, %265 : vector<1x128xf32>
    %269 = arith.subf %267, %268 : vector<1x128xf32>
    %cst_134 = arith.constant 9.99999974E-6 : f32
    %270 = vector.broadcast %cst_134 : f32 to vector<1x128xf32>
    %271 = arith.addf %269, %270 : vector<1x128xf32>
    %272 = math.rsqrt %271 : vector<1x128xf32>
    %c7 = arith.constant 7 : index
    %c0_135 = arith.constant 0 : index
    %c0_136 = arith.constant 0 : index
    %273 = vector.load %arg11[%c7, %c0_135, %c0_136] : memref<8x32x1xf32, #tpu.memory_space<vmem>>, vector<1x32x1xf32>
    %274 = vector.shape_cast %273 : vector<1x32x1xf32> to vector<32x1xf32>
    %c7_137 = arith.constant 7 : index
    %c0_138 = arith.constant 0 : index
    %c0_139 = arith.constant 0 : index
    %275 = vector.load %arg12[%c7_137, %c0_138, %c0_139] : memref<8x32x1xf32, #tpu.memory_space<vmem>>, vector<1x32x1xf32>
    %276 = vector.shape_cast %275 : vector<1x32x1xf32> to vector<32x1xf32>
    %277 = vector.broadcast %265 : vector<1x128xf32> to vector<32x128xf32>
    %278 = arith.subf %258, %277 : vector<32x128xf32>
    %279 = vector.broadcast %272 : vector<1x128xf32> to vector<32x128xf32>
    %280 = arith.mulf %278, %279 : vector<32x128xf32>
    %281 = vector.broadcast %274 : vector<32x1xf32> to vector<32x128xf32>
    %282 = arith.mulf %280, %281 : vector<32x128xf32>
    %283 = vector.broadcast %276 : vector<32x1xf32> to vector<32x128xf32>
    %284 = arith.addf %282, %283 : vector<32x128xf32>
    %285 = arith.negf %284 : vector<32x128xf32>
    %286 = math.exp %285 : vector<32x128xf32>
    %cst_140 = arith.constant 1.000000e+00 : f32
    %287 = vector.broadcast %cst_140 : f32 to vector<32x128xf32>
    %288 = arith.addf %287, %286 : vector<32x128xf32>
    %289 = arith.divf %287, %288 : vector<32x128xf32>
    %290 = arith.mulf %284, %289 : vector<32x128xf32>
    %c256 = arith.constant 256 : index
    %c0_141 = arith.constant 0 : index
    %291 = vector.load %arg15[%c256, %c0_141] : memref<288x128xf32, #tpu.memory_space<vmem>>, vector<32x128xf32>
    tpu.vector_store %arg15[%c256, %c0_141], %290 {strides = array<i32>} : memref<288x128xf32, #tpu.memory_space<vmem>>, vector<32x128xf32>,
    %c0_142 = arith.constant 0 : index
    %c0_143 = arith.constant 0 : index
    %292 = vector.load %arg13[%c0_142, %c0_143] : memref<16x288xf32, #tpu.memory_space<vmem>>, vector<16x288xf32>
    %c0_144 = arith.constant 0 : index
    %c0_145 = arith.constant 0 : index
    %293 = vector.load %arg15[%c0_144, %c0_145] : memref<288x128xf32, #tpu.memory_space<vmem>>, vector<288x128xf32>
    %cst_146 = arith.constant dense<0.000000e+00> : vector<16x128xf32>
    %294 = tpu.matmul %292, %293, %cst_146 {dimension_numbers = #tpu.dot_dimension_numbers<[1], [0], [0], [1], [0, 0, 1, 1], [], []>} : vector<16x288xf32>, vector<288x128xf32>, vector<16x128xf32> -> vector<16x128xf32>
    %c0_147 = arith.constant 0 : index
    %c0_148 = arith.constant 0 : index
    %295 = vector.load %arg14[%c0_147, %c0_148] : memref<16x128xf32, #tpu.memory_space<vmem>>, vector<16x128xf32>
    tpu.vector_store %arg14[%c0_147, %c0_148], %294 {strides = array<i32>} : memref<16x128xf32, #tpu.memory_space<vmem>>, vector<16x128xf32>,
    return
  }
  func.func @transform_0(%arg0: i32) -> (i32, i32) {
    %c0_i32 = arith.constant 0 : i32
    %c0_i32_0 = arith.constant 0 : i32
    return %c0_i32, %arg0 : i32, i32
  }
  func.func @transform_1(%arg0: i32) -> (i32, i32) {
    %c0_i32 = arith.constant 0 : i32
    %c0_i32_0 = arith.constant 0 : i32
    return %c0_i32, %arg0 : i32, i32
  }
  func.func @transform_2(%arg0: i32) -> (i32, i32) {
    %c0_i32 = arith.constant 0 : i32
    %c0_i32_0 = arith.constant 0 : i32
    %c0_i32_1 = arith.constant 0 : i32
    return %c0_i32, %c0_i32_0 : i32, i32
  }
  func.func @transform_3(%arg0: i32) -> (i32, i32) {
    %c0_i32 = arith.constant 0 : i32
    %c0_i32_0 = arith.constant 0 : i32
    %c0_i32_1 = arith.constant 0 : i32
    return %c0_i32, %c0_i32_0 : i32, i32
  }
  func.func @transform_4(%arg0: i32) -> (i32, i32) {
    %c0_i32 = arith.constant 0 : i32
    %c0_i32_0 = arith.constant 0 : i32
    %c0_i32_1 = arith.constant 0 : i32
    return %c0_i32, %c0_i32_0 : i32, i32
  }
  func.func @transform_5(%arg0: i32) -> (i32, i32) {
    %c0_i32 = arith.constant 0 : i32
    %c0_i32_0 = arith.constant 0 : i32
    %c0_i32_1 = arith.constant 0 : i32
    return %c0_i32, %c0_i32_0 : i32, i32
  }
  func.func @transform_6(%arg0: i32) -> (i32, i32) {
    %c0_i32 = arith.constant 0 : i32
    %c0_i32_0 = arith.constant 0 : i32
    %c0_i32_1 = arith.constant 0 : i32
    return %c0_i32, %c0_i32_0 : i32, i32
  }
  func.func @transform_7(%arg0: i32) -> (i32, i32) {
    %c0_i32 = arith.constant 0 : i32
    %c0_i32_0 = arith.constant 0 : i32
    %c0_i32_1 = arith.constant 0 : i32
    return %c0_i32, %c0_i32_0 : i32, i32
  }
  func.func @transform_8(%arg0: i32) -> (i32, i32) {
    %c0_i32 = arith.constant 0 : i32
    %c0_i32_0 = arith.constant 0 : i32
    %c0_i32_1 = arith.constant 0 : i32
    return %c0_i32, %c0_i32_0 : i32, i32
  }
  func.func @transform_9(%arg0: i32) -> (i32, i32) {
    %c0_i32 = arith.constant 0 : i32
    %c0_i32_0 = arith.constant 0 : i32
    %c0_i32_1 = arith.constant 0 : i32
    return %c0_i32, %c0_i32_0 : i32, i32
  }
  func.func @transform_10(%arg0: i32) -> (i32, i32, i32) {
    %c0_i32 = arith.constant 0 : i32
    %c0_i32_0 = arith.constant 0 : i32
    %c0_i32_1 = arith.constant 0 : i32
    %c0_i32_2 = arith.constant 0 : i32
    return %c0_i32, %c0_i32_0, %c0_i32_1 : i32, i32, i32
  }
  func.func @transform_11(%arg0: i32) -> (i32, i32, i32) {
    %c0_i32 = arith.constant 0 : i32
    %c0_i32_0 = arith.constant 0 : i32
    %c0_i32_1 = arith.constant 0 : i32
    %c0_i32_2 = arith.constant 0 : i32
    return %c0_i32, %c0_i32_0, %c0_i32_1 : i32, i32, i32
  }
  func.func @transform_12(%arg0: i32) -> (i32, i32) {
    %c0_i32 = arith.constant 0 : i32
    %c0_i32_0 = arith.constant 0 : i32
    %c0_i32_1 = arith.constant 0 : i32
    return %c0_i32, %c0_i32_0 : i32, i32
  }
  func.func @transform_13(%arg0: i32) -> (i32, i32) {
    %c0_i32 = arith.constant 0 : i32
    %c0_i32_0 = arith.constant 0 : i32
    return %c0_i32, %arg0 : i32, i32
  }
}

</mosaic_0001>

<bundles_post_ra>
// kernel: tpu_custom_call.1
= control target key start
LH: loop header
LB: loop body
LE: loop exit
PB: predicated region body
PF: predicated region fallthrough
CT: control target
= control target key end

     0   :  { %vm60_vm0 = vcmask 195584   ;;  %v3018_v3 = vmov 0   ;;  %s3671_s0 = inlined_call_operand.vmem [shape: f32[24,128], index: 0, kind: input, shape index: {}]   ;;  %s3672_s1 = inlined_call_operand.vmem [shape: f32[8,128], index: 1, kind: input, shape index: {}]   ;;  %s3673_s2 = inlined_call_operand.vmem [shape: f32[32,24], index: 2, kind: input, shape index: {}]   ;;  %s3674_s3 = inlined_call_operand.vmem [shape: f32[32,56], index: 3, kind: input, shape index: {}]   ;;  %s3675_s4 = inlined_call_operand.vmem [shape: f32[32,88], index: 4, kind: input, shape index: {}]   ;;  %s3676_s5 = inlined_call_operand.vmem [shape: f32[32,120], index: 5, kind: input, shape index: {}]   ;;  %s3677_s6 = inlined_call_operand.vmem [shape: f32[32,160], index: 6, kind: input, shape index: {}]   ;;  %s3678_s7 = inlined_call_operand.vmem [shape: f32[32,192], index: 7, kind: input, shape index: {}]   ;;  %s3679_s8 = inlined_call_operand.vmem [shape: f32[32,224], index: 8, kind: input, shape index: {}]   ;;  %s3680_s9 = inlined_call_operand.vmem [shape: f32[32,256], index: 9, kind: input, shape index: {}]   ;;  %s3681_s10 = inlined_call_operand.vmem [shape: f32[8,32,1], index: 10, kind: input, shape index: {}]   ;;  %s3682_s11 = inlined_call_operand.vmem [shape: f32[8,32,1], index: 11, kind: input, shape index: {}]   ;;  %s3683_s12 = inlined_call_operand.vmem [shape: f32[16,288], index: 12, kind: input, shape index: {}]   ;;  %s3684_s13 = inlined_call_operand.hbm [shape: f32[16,128], index: 13, kind: output, shape index: {}]  }
   0x1   :  { %v45_v0 = vld [vmem:[%s3671_s0] sm:$0xff]  ;;  %v46_v1 = vld [vmem:[%s3671_s0 + $0x8] sm:$0xff]  ;;  %2849 = vset.pattern.permute.xlu1 %v3018_v3  ;;  %2848 = vset.pattern.permute.xlu0 %v3018_v3  ;;  %v3113_v7 = vld [vmem:[%s3671_s0 + $0x10] sm:$0xff] }
   0x2   :  { %v3099_v2 = vpack.c.bf16 %v46_v1, %v45_v0  ;;  %v53_v4 = vld [vmem:[%s3673_s2] sm:$0xff]  ;;  %v187_v5 = vld [vmem:[%s3681_s10 + $0x8] sm:$0xff]  ;;  %v188_v8 = vld [vmem:[%s3681_s10 + $0x10] sm:$0xff] }
   0x3   :  { %v186_v6 = vld [vmem:[%s3681_s10] sm:$0xff]  ;;  %2498 = vmatprep.mubr.msk.f32.mxu1 %vm60_vm0, %v53_v4  ;;  %209 = vperm.xlu1 %2849, %v187_v5   ;;  %v54_v10 = vld [vmem:[%s3673_s2 + $0x8] sm:$0xff]  ;;  %v55_v11 = vld [vmem:[%s3673_s2 + $0x10] sm:$0xff] }
   0x4   :  { %2600 = vmatprep.subr.bf16.mxu1 %v3099_v2  ;;  %204 = vperm.xlu0 %2848, %v186_v6   ;;  %v190_v9 = vld [vmem:[%s3682_s11] sm:$0xff]  ;;  %v192_v12 = vld [vmem:[%s3682_s11 + $0x10] sm:$0xff]  ;;  %v191_v13 = vld [vmem:[%s3682_s11 + $0x8] sm:$0xff] }
   0x5   :  { %2602 = vmatpush3.bf16.msra.mxu1 %v3099_v2  ;;  %2616 = vmatprep.subr.bf16.mxu0 %v3099_v2  ;;  %v56_v14 = vld [vmem:[%s3673_s2 + $0x18] sm:$0xff]  ;;  %v2250_v17 = vld [vmem:[%s3682_s11 + $0x20] sm:$0xff]  ;;  %v2248_v19 = vld [vmem:[%s3681_s10 + $0x30] sm:$0xff] }
   0x6   :  { %2496 = vmatprep.subr.mxu1 %v3113_v7  ;;  %2618 = vmatpush3.bf16.msra.mxu0 %v3099_v2  ;;  %v193_v15 = vld [vmem:[%s3682_s11 + $0x18] sm:$0xff]  ;;  %v2246_v18 = vld [vmem:[%s3681_s10 + $0x20] sm:$0xff]  ;;  %v2247_v20 = vld [vmem:[%s3681_s10 + $0x28] sm:$0xff] }
   0x7   :  { %214 = vperm.xlu1 %2849, %v188_v8   ;;  %v189_v16 = vld [vmem:[%s3681_s10 + $0x18] sm:$0xff]  ;;  %v2252_v21 = vld [vmem:[%s3682_s11 + $0x30] sm:$0xff] }
   0x8   :  { %228 = vperm.xlu0 %2848, %v190_v9  }
   0x9   :  { %2497 = vmatpush3.msra.mxu1 %v3113_v7 }
   0xa   :  { %2499 = vmatmul.mubr.msk.f32.vlgmr.msra.gmra.mrb[0].mxu1 %vm60_vm0, %v54_v10  ;;  %2604 = vmatprep.subr.bf16.mxu1 %v3099_v2 }
   0xb   :  { %2501 = vmatprep.mubr.msk.f32.mxu1 %vm60_vm0, %v55_v11  ;;  %238 = vperm.xlu1 %2849, %v192_v12  }
   0xc   :  { %233 = vperm.xlu0 %2848, %v191_v13   ;;  %2606 = vmatpush3.bf16.msra.mxu1 %v3099_v2 }
   0xe   :  { %2502 = vmatmul.mubr.msk.f32.gmra.mrb[2].mxu1 %vm60_vm0, %v56_v14 }
   0xf   :  { %243 = vperm.xlu1 %2849, %v193_v15  }
  0x10   :  { %219 = vperm.xlu0 %2848, %v189_v16  }
  0x13   :  { %463 = vperm.xlu1 %2849, %v2250_v17  }
  0x14   :  { %439 = vperm.xlu0 %2848, %v2246_v18  }
  0x17   :  { %449 = vperm.xlu1 %2849, %v2248_v19  }
  0x18   :  { %444 = vperm.xlu0 %2848, %v2247_v20  }
  0x19   :  { %18 = vsyncpa [#allocation4], 0  ;;  %v2251_v22 = vld [vmem:[%s3682_s11 + $0x28] sm:$0xff]  ;;  %v2253_v23 = vld [vmem:[%s3682_s11 + $0x38] sm:$0xff]  ;;  %vm293_vm1 = vcmask 457728   ;;  %vm532_vm2 = vcmask 719872  }
  0x1a   :  { %v2249_v24 = vld [vmem:[%s3681_s10 + $0x38] sm:$0xff]  ;;  %v2266_v25 = vld [vmem:[%s3682_s11 + $0x40] sm:$0xff]  ;;  %v2264_v27 = vld [vmem:[%s3681_s10 + $0x50] sm:$0xff]  ;;  %vm775_vm3 = vcmask 982016   ;;  %vm1027_vm4 = vcmask 261120   ;;  %vm1283_vm5 = vcmask 523264  }
  0x1b   :  { %473 = vperm.xlu1 %2849, %v2252_v21   ;;  %v2262_v26 = vld [vmem:[%s3681_s10 + $0x40] sm:$0xff]  ;;  %v2263_v28 = vld [vmem:[%s3681_s10 + $0x48] sm:$0xff]  ;;  %v2268_v29 = vld [vmem:[%s3682_s11 + $0x50] sm:$0xff]  ;;  %vm1543_vm6 = vcmask 785408   ;;  %s3020_s15 = smov [#allocation3]  }
  0x1c   :  { %468 = vperm.xlu0 %2848, %v2251_v22   ;;  %v2267_v30 = vld [vmem:[%s3682_s11 + $0x48] sm:$0xff]  ;;  %v2269_v31 = vld [vmem:[%s3682_s11 + $0x58] sm:$0xff]  ;;  %v2282_v33 = vld [vmem:[%s3682_s11 + $0x60] sm:$0xff]  ;;  %s2223_s16 = sshll.u32 %s3020_s15, 4  ;;  %s2224_s16 = int_to_ptr.vmem [resolvable:$true] %s2223_s16 }
  0x1d   :  { %v2265_v32 = vld [vmem:[%s3681_s10 + $0x58] sm:$0xff]  ;;  %v2278_v34 = vld [vmem:[%s3681_s10 + $0x60] sm:$0xff]  ;;  %v2280_v35 = vld [vmem:[%s3681_s10 + $0x70] sm:$0xff]  ;;  %s2994_s17 = scalar_lea.vmem %s2224_s16, 256  ;;  %p2999_p1 = scmp.lt.s32.totalorder %s2224_s16, %s2224_s16 }
  0x1e   :  { %v2279_v36 = vld [vmem:[%s3681_s10 + $0x68] sm:$0xff]  ;;  %v2284_v37 = vld [vmem:[%s3682_s11 + $0x70] sm:$0xff]  ;;  %v2285_v39 = vld [vmem:[%s3682_s11 + $0x78] sm:$0xff]  ;;  %p2995_p0 = scmp.ne.s32.totalorder %s2224_s16, %s2994_s17  ;;  %p3000_p2 = scmp.lt.s32.totalorder %s2994_s17, %s2994_s17 }
  0x1f   :  { %478 = vperm.xlu1 %2849, %v2253_v23   ;;  %v2283_v38 = vld [vmem:[%s3682_s11 + $0x68] sm:$0xff]  ;;  %v2281_v40 = vld [vmem:[%s3681_s10 + $0x78] sm:$0xff]  ;;  %v2294_v42 = vld [vmem:[%s3681_s10 + $0x80] sm:$0xff] }
  0x20   :  { %454 = vperm.xlu0 %2848, %v2249_v24   ;;  %v2295_v41 = vld [vmem:[%s3681_s10 + $0x88] sm:$0xff]  ;;  %v2298_v44 = vld [vmem:[%s3682_s11 + $0x80] sm:$0xff]  ;;  %v2297_v45 = vld [vmem:[%s3681_s10 + $0x98] sm:$0xff]  ;;  %p3001_p3 = por %p3000_p2, %p2999_p1 }
  0x21   :  { %v2299_v43 = vld [vmem:[%s3682_s11 + $0x88] sm:$0xff]  ;;  %v2296_v46 = vld [vmem:[%s3681_s10 + $0x90] sm:$0xff]  ;;  %v2301_v47 = vld [vmem:[%s3682_s11 + $0x98] sm:$0xff] }
  0x22   :  { %v2300_v48 = vld [vmem:[%s3682_s11 + $0x90] sm:$0xff]  ;;  %v2311_v49 = vld [vmem:[%s3681_s10 + $0xa8] sm:$0xff]  ;;  %v2310_v50 = vld [vmem:[%s3681_s10 + $0xa0] sm:$0xff]  ;;  %p3002_p4 = pnand %p3001_p3, %p2995_p0 }
  0x23   :  { %702 = vperm.xlu1 %2849, %v2266_v25   ;;  %v2315_v51 = vld [vmem:[%s3682_s11 + $0xa8] sm:$0xff]  ;;  %v2314_v52 = vld [vmem:[%s3682_s11 + $0xa0] sm:$0xff]  ;;  %v2313_v53 = vld [vmem:[%s3681_s10 + $0xb8] sm:$0xff] }
  0x24   :  { %678 = vperm.xlu0 %2848, %v2262_v26   ;;  %v2312_v54 = vld [vmem:[%s3681_s10 + $0xb0] sm:$0xff]  ;;  %v2317_v55 = vld [vmem:[%s3682_s11 + $0xb8] sm:$0xff]  ;;  %v2327_v57 = vld [vmem:[%s3681_s10 + $0xc8] sm:$0xff] }
  0x25   :  { %v2316_v56 = vld [vmem:[%s3682_s11 + $0xb0] sm:$0xff]  ;;  %v2326_v58 = vld [vmem:[%s3681_s10 + $0xc0] sm:$0xff]  ;;  %v2331_v59 = vld [vmem:[%s3682_s11 + $0xc8] sm:$0xff] }
  0x26   :  { %v2330_v60 = vld [vmem:[%s3682_s11 + $0xc0] sm:$0xff]  ;;  %v2329_v61 = vld [vmem:[%s3681_s10 + $0xd8] sm:$0xff]  ;;  %v2328_v62 = vld [vmem:[%s3681_s10 + $0xd0] sm:$0xff] }
  0x27   :  { %688 = vperm.xlu1 %2849, %v2264_v27   ;;  %v2333_v63 = vld [vmem:[%s3682_s11 + $0xd8] sm:$0xff]  ;;  %v2332_v0 = vld [vmem:[%s3682_s11 + $0xd0] sm:$0xff]  ;;  %v2339_v1 = vld [vmem:[%s3681_s10 + $0xe8] sm:$0xff] }
  0x28   :  { %683 = vperm.xlu0 %2848, %v2263_v28   ;;  %v2338_v3 = vld [vmem:[%s3681_s10 + $0xe0] sm:$0xff]  ;;  %v2343_v4 = vld [vmem:[%s3682_s11 + $0xe8] sm:$0xff]  ;;  %v2341_v6 = vld [vmem:[%s3681_s10 + $0xf8] sm:$0xff] }
  0x29   :  { %v2342_v5 = vld [vmem:[%s3682_s11 + $0xe0] sm:$0xff]  ;;  %v2340_v8 = vld [vmem:[%s3681_s10 + $0xf0] sm:$0xff]  ;;  %v2345_v9 = vld [vmem:[%s3682_s11 + $0xf8] sm:$0xff] }
  0x2a   :  { %v2344_v10 = vld [vmem:[%s3682_s11 + $0xf0] sm:$0xff]  ;;  %v282_v11 = vld [vmem:[%s3674_s3] sm:$0xff] }
  0x2b   :  { %712 = vperm.xlu1 %2849, %v2268_v29   ;;  %2518 = vmatprep.mubr.msk.f32.mxu1 %vm293_vm1, %v282_v11 }
  0x2c   :  { %707 = vperm.xlu0 %2848, %v2267_v30  }
  0x2f   :  { %717 = vperm.xlu1 %2849, %v2269_v31  }
  0x30   :  { %693 = vperm.xlu0 %2848, %v2265_v32  }
  0x33   :  { %945 = vperm.xlu1 %2849, %v2282_v33  }
  0x34   :  { %921 = vperm.xlu0 %2848, %v2278_v34  }
  0x37   :  { %931 = vperm.xlu1 %2849, %v2280_v35  }
  0x38   :  { %926 = vperm.xlu0 %2848, %v2279_v36  }
  0x3b   :  { %955 = vperm.xlu1 %2849, %v2284_v37  }
  0x3c   :  { %950 = vperm.xlu0 %2848, %v2283_v38  }
  0x3f   :  { %960 = vperm.xlu1 %2849, %v2285_v39  }
  0x40   :  { %936 = vperm.xlu0 %2848, %v2281_v40  }
  0x43   :  { %1178 = vperm.xlu1 %2849, %v2295_v41  }
  0x44   :  { %1173 = vperm.xlu0 %2848, %v2294_v42  }
  0x47   :  { %1202 = vperm.xlu1 %2849, %v2299_v43  }
  0x48   :  { %1197 = vperm.xlu0 %2848, %v2298_v44  }
  0x4b   :  { %1188 = vperm.xlu1 %2849, %v2297_v45  }
  0x4c   :  { %1183 = vperm.xlu0 %2848, %v2296_v46  }
  0x4f   :  { %1212 = vperm.xlu1 %2849, %v2301_v47  }
  0x50   :  { %1207 = vperm.xlu0 %2848, %v2300_v48  }
  0x53   :  { %1434 = vperm.xlu1 %2849, %v2311_v49  }
  0x54   :  { %1429 = vperm.xlu0 %2848, %v2310_v50  }
  0x57   :  { %1458 = vperm.xlu1 %2849, %v2315_v51  }
  0x58   :  { %1453 = vperm.xlu0 %2848, %v2314_v52  }
  0x5b   :  { %1444 = vperm.xlu1 %2849, %v2313_v53  }
  0x5c   :  { %1439 = vperm.xlu0 %2848, %v2312_v54  }
  0x5f   :  { %1468 = vperm.xlu1 %2849, %v2317_v55  }
  0x60   :  { %1463 = vperm.xlu0 %2848, %v2316_v56  }
  0x63   :  { %1694 = vperm.xlu1 %2849, %v2327_v57  }
  0x64   :  { %1689 = vperm.xlu0 %2848, %v2326_v58  }
  0x67   :  { %1718 = vperm.xlu1 %2849, %v2331_v59  }
  0x68   :  { %1713 = vperm.xlu0 %2848, %v2330_v60  }
  0x6b   :  { %1704 = vperm.xlu1 %2849, %v2329_v61  }
  0x6c   :  { %1699 = vperm.xlu0 %2848, %v2328_v62  }
  0x6f   :  { %1728 = vperm.xlu1 %2849, %v2333_v63  }
  0x70   :  { %1723 = vperm.xlu0 %2848, %v2332_v0  }
  0x73   :  { %1945 = vperm.xlu1 %2849, %v2339_v1  }
  0x74   :  { %1940 = vperm.xlu0 %2848, %v2338_v3  }
  0x77   :  { %1969 = vperm.xlu1 %2849, %v2343_v4  }
  0x78   :  { %1964 = vperm.xlu0 %2848, %v2342_v5  }
  0x7b   :  { %1955 = vperm.xlu1 %2849, %v2341_v6  }
  0x7c   :  { %1950 = vperm.xlu0 %2848, %v2340_v8  }
  0x7f   :  { %1979 = vperm.xlu1 %2849, %v2345_v9  }
  0x80   :  { %1974 = vperm.xlu0 %2848, %v2344_v10  }
  0x82   :  { %v210_v46 = vpop.permute.xlu1 %209 }
  0x83   :  { %v205_v39 = vpop.permute.xlu0 %204 }
  0x86   :  { %v215_v50 = vpop.permute.xlu1 %214 }
  0x87   :  { %v229_v49 = vpop.permute.xlu0 %228 }
  0x8a   :  { %v239_v52 = vpop.permute.xlu1 %238 }
  0x8b   :  { %v234_v51 = vpop.permute.xlu0 %233 }
  0x8e   :  { %v244_v63 = vpop.permute.xlu1 %243 }
  0x8f   :  { %v220_v58 = vpop.permute.xlu0 %219 }
  0xdd   :  { %v2500_v12 = vpop.f32.mrb[0].mxu1 }
  0xde   :  { %v168_v13 = vmul.f32 %v2500_v12, %v2500_v12  ;;  %v139_v14 = vpop.f32.mrb[1].mxu1 }
  0xdf   :  { %v158_v15 = vadd.f32 %v2500_v12, %v139_v14  ;;  %v167_v16 = vmul.f32 %v139_v14, %v139_v14 }
  0xe1   :  { %v171_v17 = vadd.f32 %v168_v13, %v167_v16  ;;  %v2503_v18 = vpop.f32.mrb[2].mxu1 }
  0xe2   :  { %v149_v19 = vpop.f32.mrb[3].mxu1  ;;  %v170_v22 = vmul.f32 %v2503_v18, %v2503_v18 }
  0xe3   :  { %v159_v20 = vadd.f32 %v158_v15, %v149_v19  ;;  %v169_v21 = vmul.f32 %v149_v19, %v149_v19 }
  0xe5   :  { %v160_v23 = vadd.f32 %v2503_v18, %v159_v20  ;;  %v172_v24 = vadd.f32 %v171_v17, %v169_v21 }
  0xe7   :  { %v161_v25 = vrot.slane %v160_v23, 4  ;;  %v173_v26 = vadd.f32 %v172_v24, %v170_v22 }
  0xe9   :  { %v162_v27 = vadd.f32 %v161_v25, %v160_v23  ;;  %v174_v28 = vrot.slane %v173_v26, 4 }
  0xeb   :  { %v163_v29 = vrot.slane %v162_v27, 2  ;;  %v175_v30 = vadd.f32 %v174_v28, %v173_v26  ;;  %v284_v28 = vld [vmem:[%s3674_s3 + $0x10] sm:$0xff] }
  0xed   :  { %v164_v31 = vadd.f32 %v163_v29, %v162_v27  ;;  %v176_v32 = vrot.slane %v175_v30, 2  ;;  %v285_v29 = vld [vmem:[%s3674_s3 + $0x18] sm:$0xff] }
  0xef   :  { %v165_v33 = vrot.slane %v164_v31, 1  ;;  %v177_v34 = vadd.f32 %v176_v32, %v175_v30  ;;  %v517_v30 = vld [vmem:[%s3675_s4] sm:$0xff] }
  0xf0   :  { %2546 = vmatprep.mubr.msk.f32.mxu0 %vm532_vm2, %v517_v30 }
  0xf1   :  { %v166_v35 = vadd.f32 %v165_v33, %v164_v31  ;;  %v178_v36 = vrot.slane %v177_v34, 1 }
  0xf3   :  { %v179_v37 = vadd.f32 %v178_v36, %v177_v34  ;;  %v180_v38 = vmul.f32 0.03125, %v166_v35 }
  0xf5   :  { %v181_v40 = vmul.f32 0.03125, %v179_v37  ;;  %v182_v41 = vmul.f32 %v180_v38, %v180_v38  ;;  %v194_v42 = vsub.f32 %v139_v14, %v180_v38  ;;  %v195_v43 = vsub.f32 %v2500_v12, %v180_v38 }
  0xf6   :  { %v196_v44 = vsub.f32 %v149_v19, %v180_v38  ;;  %v197_v45 = vsub.f32 %v2503_v18, %v180_v38 }
  0xf7   :  { %v183_v47 = vsub.f32 %v181_v40, %v182_v41 }
  0xf9   :  { %v184_v48 = vadd.f32 1e-05, %v183_v47 }
  0xfb   :  { %2850 = vrsqrt.f32 %v184_v48 }
 0x105   :  { %v2851_v53 = vpop.eup %2850 }
 0x106   :  { %v198_v54 = vmul.f32 %v2851_v53, %v194_v42  ;;  %v199_v55 = vmul.f32 %v2851_v53, %v195_v43  ;;  %v200_v56 = vmul.f32 %v2851_v53, %v196_v44  ;;  %v201_v57 = vmul.f32 %v2851_v53, %v197_v45 }
 0x108   :  { %v222_v59 = vmul.f32 %v205_v39, %v198_v54  ;;  %v223_v60 = vmul.f32 %v210_v46, %v199_v55  ;;  %v224_v61 = vmul.f32 %v215_v50, %v200_v56  ;;  %v225_v62 = vmul.f32 %v220_v58, %v201_v57  ;;  %v440_v58 = vpop.permute.xlu0 %439 }
 0x10a   :  { %v246_v0 = vadd.f32 %v229_v49, %v222_v59  ;;  %v247_v1 = vadd.f32 %v234_v51, %v223_v60  ;;  %v248_v3 = vadd.f32 %v239_v52, %v224_v61  ;;  %v249_v4 = vadd.f32 %v244_v63, %v225_v62 }
 0x10c   :  { %v2238_v5 = vmul.f32 -1.442695, %v246_v0  ;;  %v2239_v6 = vmul.f32 -1.442695, %v247_v1  ;;  %v2240_v8 = vmul.f32 -1.442695, %v248_v3 }
 0x10d   :  { %v2241_v9 = vmul.f32 -1.442695, %v249_v4 }
 0x10e   :  { %2852 = vpow2.f32 %v2238_v5  ;;  %v445_v5 = vpop.permute.xlu0 %444 }
 0x10f   :  { %2854 = vpow2.f32 %v2239_v6 }
 0x110   :  { %2856 = vpow2.f32 %v2240_v8 }
 0x111   :  { %2858 = vpow2.f32 %v2241_v9 }
 0x112   :  { %v469_v8 = vpop.permute.xlu0 %468 }
 0x118   :  { %v2853_v10 = vpop.eup %2852 }
 0x119   :  { %v2855_v11 = vpop.eup %2854  ;;  %v262_v12 = vadd.f32 1.0, %v2853_v10 }
 0x11a   :  { %v2857_v13 = vpop.eup %2856  ;;  %v263_v14 = vadd.f32 1.0, %v2855_v11 }
 0x11b   :  { %v2859_v15 = vpop.eup %2858  ;;  %v264_v16 = vadd.f32 1.0, %v2857_v13  ;;  %2860 = vrcp.f32 %v262_v12 }
 0x11c   :  { %2862 = vrcp.f32 %v263_v14  ;;  %v265_v17 = vadd.f32 1.0, %v2859_v15  ;;  %v455_v15 = vpop.permute.xlu0 %454 }
 0x11d   :  { %2864 = vrcp.f32 %v264_v16 }
 0x11e   :  { %2866 = vrcp.f32 %v265_v17 }
 0x125   :  { %v2861_v18 = vpop.eup %2860 }
 0x126   :  { %v2863_v19 = vpop.eup %2862  ;;  %v274_v20 = vmul.f32 %v2861_v18, %v246_v0 }
 0x127   :  { %v2865_v21 = vpop.eup %2864  ;;  %v275_v22 = vmul.f32 %v2863_v19, %v247_v1  ;;  %v464_v1 = vpop.permute.xlu1 %463 }
 0x128   :  { %v276_v23 = vmul.f32 %v2865_v21, %v248_v3  ;;  %v3327_v24 = vpack.c.bf16 %v274_v20, %v3113_v7  ;;  %v2867_v26 = vpop.eup %2866  ;;  %v283_v7 = vld [vmem:[%s3674_s3 + $0x8] sm:$0xff] }
 0x129   :  { %v3337_v27 = vmul.f32 %v2867_v26, %v249_v4 }
 0x12a   :  { %v3329_v25 = vpack.c.bf16 %v276_v23, %v275_v22  ;;  %2608 = vmatprep.subr.bf16.mxu1 %v3327_v24  ;;  %2620 = vmatprep.subr.bf16.mxu0 %v3327_v24 }
 0x12b   :  { %2610 = vmatpush3.bf16.msra.mxu1 %v3327_v24  ;;  %2622 = vmatpush3.bf16.msra.mxu0 %v3327_v24  ;;  %v450_v6 = vpop.permute.xlu1 %449 }
 0x12c   :  { %2612 = vmatprep.subr.bf16.mxu1 %v3329_v25  ;;  %2624 = vmatprep.subr.bf16.mxu0 %v3329_v25 }
 0x12f   :  { %2614 = vmatpush3.bf16.msra.mxu1 %v3329_v25  ;;  %2626 = vmatpush3.bf16.msra.mxu0 %v3329_v25  ;;  %v474_v9 = vpop.permute.xlu1 %473 }
 0x130   :  { %2516 = vmatprep.subr.mxu1 %v3337_v27 }
 0x133   :  { %2517 = vmatpush3.msra.mxu1 %v3337_v27  ;;  %v479_v20 = vpop.permute.xlu1 %478 }
 0x134   :  { %2519 = vmatmul.mubr.msk.f32.vlgmr.msra.gmra.mrb[4].mxu1 %vm293_vm1, %v283_v7  ;;  %2636 = vmatprep.subr.bf16.mxu1 %v3099_v2 }
 0x135   :  { %2638 = vmatpush3.bf16.msra.mxu1 %v3099_v2  ;;  %2521 = vmatprep.mubr.msk.f32.mxu1 %vm293_vm1, %v284_v28 }
 0x136   :  { %2640 = vmatprep.subr.bf16.mxu1 %v3327_v24 }
 0x138   :  { %2522 = vmatmul.mubr.msk.f32.gmra.mrb[6].mxu1 %vm293_vm1, %v285_v29 }
 0x139   :  { %2642 = vmatpush3.bf16.msra.mxu1 %v3327_v24 }
 0x13a   :  { %2644 = vmatprep.subr.bf16.mxu1 %v3329_v25 }
 0x13d   :  { %2646 = vmatpush3.bf16.msra.mxu1 %v3329_v25 }
 0x207   :  { %v2520_v31 = vpop.f32.mrb[4].mxu1 }
 0x208   :  { %v401_v32 = vmul.f32 %v2520_v31, %v2520_v31  ;;  %v372_v33 = vpop.f32.mrb[5].mxu1 }
 0x209   :  { %v391_v34 = vadd.f32 %v2520_v31, %v372_v33  ;;  %v400_v35 = vmul.f32 %v372_v33, %v372_v33 }
 0x20b   :  { %v404_v36 = vadd.f32 %v401_v32, %v400_v35  ;;  %v2523_v37 = vpop.f32.mrb[6].mxu1 }
 0x20c   :  { %v382_v38 = vpop.f32.mrb[7].mxu1  ;;  %v403_v41 = vmul.f32 %v2523_v37, %v2523_v37 }
 0x20d   :  { %v392_v39 = vadd.f32 %v391_v34, %v382_v38  ;;  %v402_v40 = vmul.f32 %v382_v38, %v382_v38 }
 0x20f   :  { %v393_v42 = vadd.f32 %v2523_v37, %v392_v39  ;;  %v405_v43 = vadd.f32 %v404_v36, %v402_v40 }
 0x211   :  { %v394_v44 = vrot.slane %v393_v42, 4  ;;  %v406_v45 = vadd.f32 %v405_v43, %v403_v41 }
 0x213   :  { %v395_v46 = vadd.f32 %v394_v44, %v393_v42  ;;  %v407_v47 = vrot.slane %v406_v45, 4 }
 0x215   :  { %v396_v48 = vrot.slane %v395_v46, 2  ;;  %v408_v49 = vadd.f32 %v407_v47, %v406_v45 }
 0x217   :  { %v397_v50 = vadd.f32 %v396_v48, %v395_v46  ;;  %v409_v51 = vrot.slane %v408_v49, 2 }
 0x219   :  { %v398_v52 = vrot.slane %v397_v50, 1  ;;  %v410_v53 = vadd.f32 %v409_v51, %v408_v49  ;;  %v519_v49 = vld [vmem:[%s3675_s4 + $0x10] sm:$0xff]  ;;  %v520_v51 = vld [vmem:[%s3675_s4 + $0x18] sm:$0xff] }
 0x21b   :  { %v399_v54 = vadd.f32 %v398_v52, %v397_v50  ;;  %v411_v55 = vrot.slane %v410_v53, 1  ;;  %v3019_v50 = vmov 0.0|0.0   ;;  %v756_v52 = vld [vmem:[%s3676_s5] sm:$0xff] }
 0x21c   :  { %2582 = vmatprep.mubr.msk.f32.mxu1 %vm775_vm3, %v756_v52 }
 0x21d   :  { %v412_v56 = vadd.f32 %v411_v55, %v410_v53  ;;  %v413_v57 = vmul.f32 0.03125, %v399_v54 }
 0x21f   :  { %v414_v59 = vmul.f32 0.03125, %v412_v56  ;;  %v415_v60 = vmul.f32 %v413_v57, %v413_v57  ;;  %v429_v61 = vsub.f32 %v372_v33, %v413_v57  ;;  %v430_v62 = vsub.f32 %v2520_v31, %v413_v57 }
 0x220   :  { %v431_v63 = vsub.f32 %v382_v38, %v413_v57  ;;  %v432_v0 = vsub.f32 %v2523_v37, %v413_v57 }
 0x221   :  { %v416_v3 = vsub.f32 %v414_v59, %v415_v60 }
 0x223   :  { %v417_v4 = vadd.f32 1e-05, %v416_v3 }
 0x225   :  { %2868 = vrsqrt.f32 %v417_v4 }
 0x22f   :  { %v2869_v10 = vpop.eup %2868 }
 0x230   :  { %v433_v11 = vmul.f32 %v2869_v10, %v429_v61  ;;  %v434_v12 = vmul.f32 %v2869_v10, %v430_v62  ;;  %v435_v13 = vmul.f32 %v2869_v10, %v431_v63  ;;  %v436_v14 = vmul.f32 %v2869_v10, %v432_v0 }
 0x232   :  { %v457_v16 = vmul.f32 %v440_v58, %v433_v11  ;;  %v458_v17 = vmul.f32 %v445_v5, %v434_v12  ;;  %v459_v18 = vmul.f32 %v450_v6, %v435_v13  ;;  %v460_v19 = vmul.f32 %v455_v15, %v436_v14 }
 0x234   :  { %v481_v21 = vadd.f32 %v464_v1, %v457_v16  ;;  %v482_v22 = vadd.f32 %v469_v8, %v458_v17  ;;  %v483_v23 = vadd.f32 %v474_v9, %v459_v18  ;;  %v484_v26 = vadd.f32 %v479_v20, %v460_v19  ;;  %v679_v18 = vpop.permute.xlu0 %678 }
 0x236   :  { %v2254_v7 = vmul.f32 -1.442695, %v481_v21  ;;  %v2255_v28 = vmul.f32 -1.442695, %v482_v22  ;;  %v2256_v29 = vmul.f32 -1.442695, %v483_v23 }
 0x237   :  { %v2257_v30 = vmul.f32 -1.442695, %v484_v26 }
 0x238   :  { %2870 = vpow2.f32 %v2254_v7  ;;  %v703_v7 = vpop.permute.xlu1 %702 }
 0x239   :  { %2872 = vpow2.f32 %v2255_v28 }
 0x23a   :  { %2874 = vpow2.f32 %v2256_v29 }
 0x23b   :  { %2876 = vpow2.f32 %v2257_v30  ;;  %v684_v30 = vpop.permute.xlu0 %683 }
 0x242   :  { %v2871_v31 = vpop.eup %2870 }
 0x243   :  { %v2873_v32 = vpop.eup %2872  ;;  %v497_v33 = vadd.f32 1.0, %v2871_v31  ;;  %v689_v31 = vpop.permute.xlu1 %688 }
 0x244   :  { %v2875_v34 = vpop.eup %2874  ;;  %v498_v35 = vadd.f32 1.0, %v2873_v32  ;;  %v708_v32 = vpop.permute.xlu0 %707 }
 0x245   :  { %v2877_v36 = vpop.eup %2876  ;;  %v499_v37 = vadd.f32 1.0, %v2875_v34  ;;  %2878 = vrcp.f32 %v497_v33 }
 0x246   :  { %2880 = vrcp.f32 %v498_v35  ;;  %v500_v38 = vadd.f32 1.0, %v2877_v36 }
 0x247   :  { %2882 = vrcp.f32 %v499_v37  ;;  %v713_v33 = vpop.permute.xlu1 %712 }
 0x248   :  { %2884 = vrcp.f32 %v500_v38 }
 0x24f   :  { %v2879_v39 = vpop.eup %2878 }
 0x250   :  { %v2881_v40 = vpop.eup %2880  ;;  %v509_v41 = vmul.f32 %v2879_v39, %v481_v21  ;;  %v694_v39 = vpop.permute.xlu0 %693 }
 0x251   :  { %v2883_v42 = vpop.eup %2882  ;;  %v510_v43 = vmul.f32 %v2881_v40, %v482_v22 }
 0x252   :  { %v511_v44 = vmul.f32 %v2883_v42, %v483_v23  ;;  %v3366_v45 = vpack.c.bf16 %v509_v41, %v3337_v27  ;;  %v2885_v47 = vpop.eup %2884  ;;  %v518_v27 = vld [vmem:[%s3675_s4 + $0x8] sm:$0xff] }
 0x253   :  { %v3376_v48 = vmul.f32 %v2885_v47, %v484_v26 }
 0x254   :  { %v3368_v46 = vpack.c.bf16 %v511_v44, %v510_v43  ;;  %2628 = vmatprep.subr.bf16.mxu0 %v3366_v45  ;;  %2648 = vmatprep.subr.bf16.mxu1 %v3366_v45  ;;  %v718_v44 = vpop.permute.xlu1 %717 }
 0x255   :  { %2630 = vmatpush3.bf16.msra.mxu0 %v3366_v45  ;;  %2650 = vmatpush3.bf16.msra.mxu1 %v3366_v45 }
 0x256   :  { %2632 = vmatprep.subr.bf16.mxu0 %v3368_v46  ;;  %2652 = vmatprep.subr.bf16.mxu1 %v3368_v46 }
 0x259   :  { %2634 = vmatpush3.bf16.msra.mxu0 %v3368_v46  ;;  %2654 = vmatpush3.bf16.msra.mxu1 %v3368_v46 }
 0x25a   :  { %2544 = vmatprep.subr.mxu0 %v3376_v48 }
 0x25d   :  { %2545 = vmatpush3.msra.mxu0 %v3376_v48 }
 0x25e   :  { %2547 = vmatmul.mubr.msk.f32.vlgmr.msra.gmra.mrb[0].mxu0 %vm532_vm2, %v518_v27  ;;  %2663 = vmatprep.subr.bf16.mxu0 %v3019_v50 }
 0x25f   :  { %2665 = vmatpush1.bf16.msra.mxu0 %v3099_v2  ;;  %2549 = vmatprep.mubr.msk.f32.mxu0 %vm532_vm2, %v519_v49 }
 0x260   :  { %2666 = vmatprep.subr.bf16.mxu0 %v3019_v50 }
 0x262   :  { %2550 = vmatmul.mubr.msk.f32.gmra.mrb[2].mxu0 %vm532_vm2, %v520_v51 }
 0x263   :  { %2668 = vmatpush1.bf16.msra.mxu0 %v3327_v24 }
 0x264   :  { %2669 = vmatprep.subr.bf16.mxu0 %v3019_v50 }
 0x267   :  { %2671 = vmatpush1.bf16.msra.mxu0 %v3329_v25 }
 0x268   :  { %2672 = vmatprep.subr.bf16.mxu0 %v3019_v50 }
 0x26b   :  { %2674 = vmatpush1.bf16.msra.mxu0 %v3366_v45 }
 0x26c   :  { %2675 = vmatprep.subr.bf16.mxu0 %v3019_v50 }
 0x26f   :  { %2677 = vmatpush1.bf16.msra.mxu0 %v3368_v46 }
 0x270   :  { %2678 = vmatprep.subr.bf16.mxu0 %v3019_v50 }
 0x331   :  { %v2548_v53 = vpop.f32.mrb[0].mxu0 }
 0x332   :  { %v640_v54 = vmul.f32 %v2548_v53, %v2548_v53  ;;  %v611_v55 = vpop.f32.mrb[1].mxu0 }
 0x333   :  { %v630_v56 = vadd.f32 %v2548_v53, %v611_v55  ;;  %v639_v57 = vmul.f32 %v611_v55, %v611_v55 }
 0x335   :  { %v643_v58 = vadd.f32 %v640_v54, %v639_v57  ;;  %v2551_v59 = vpop.f32.mrb[2].mxu0 }
 0x336   :  { %v621_v60 = vpop.f32.mrb[3].mxu0  ;;  %v642_v63 = vmul.f32 %v2551_v59, %v2551_v59 }
 0x337   :  { %v631_v61 = vadd.f32 %v630_v56, %v621_v60  ;;  %v641_v62 = vmul.f32 %v621_v60, %v621_v60 }
 0x339   :  { %v632_v0 = vadd.f32 %v2551_v59, %v631_v61  ;;  %v644_v1 = vadd.f32 %v643_v58, %v641_v62 }
 0x33b   :  { %v633_v3 = vrot.slane %v632_v0, 4  ;;  %v645_v4 = vadd.f32 %v644_v1, %v642_v63 }
 0x33d   :  { %v634_v5 = vadd.f32 %v633_v3, %v632_v0  ;;  %v646_v6 = vrot.slane %v645_v4, 4 }
 0x33f   :  { %v635_v8 = vrot.slane %v634_v5, 2  ;;  %v647_v9 = vadd.f32 %v646_v6, %v645_v4 }
 0x341   :  { %v636_v10 = vadd.f32 %v635_v8, %v634_v5  ;;  %v648_v11 = vrot.slane %v647_v9, 2 }
 0x343   :  { %v637_v12 = vrot.slane %v636_v10, 1  ;;  %v649_v13 = vadd.f32 %v648_v11, %v647_v9 }
 0x345   :  { %v638_v14 = vadd.f32 %v637_v12, %v636_v10  ;;  %v650_v15 = vrot.slane %v649_v13, 1  ;;  %v758_v12 = vld [vmem:[%s3676_s5 + $0x10] sm:$0xff] }
 0x347   :  { %v651_v16 = vadd.f32 %v650_v15, %v649_v13  ;;  %v652_v17 = vmul.f32 0.03125, %v638_v14  ;;  %v759_v13 = vld [vmem:[%s3676_s5 + $0x18] sm:$0xff]  ;;  %v1000_v14 = vld [vmem:[%s3677_s6 + $0x8] sm:$0xff] }
 0x348   :  { %2290 = vmatprep.mubr.msk.f32.mxu0 %vm1027_vm4, %v1000_v14 }
 0x349   :  { %v653_v19 = vmul.f32 0.03125, %v651_v16  ;;  %v654_v20 = vmul.f32 %v652_v17, %v652_v17  ;;  %v668_v21 = vsub.f32 %v611_v55, %v652_v17  ;;  %v669_v22 = vsub.f32 %v2548_v53, %v652_v17 }
 0x34a   :  { %v670_v23 = vsub.f32 %v621_v60, %v652_v17  ;;  %v671_v26 = vsub.f32 %v2551_v59, %v652_v17 }
 0x34b   :  { %v655_v28 = vsub.f32 %v653_v19, %v654_v20 }
 0x34d   :  { %v656_v29 = vadd.f32 1e-05, %v655_v28 }
 0x34f   :  { %2886 = vrsqrt.f32 %v656_v29 }
 0x359   :  { %v2887_v34 = vpop.eup %2886 }
 0x35a   :  { %v672_v35 = vmul.f32 %v2887_v34, %v668_v21  ;;  %v673_v36 = vmul.f32 %v2887_v34, %v669_v22  ;;  %v674_v37 = vmul.f32 %v2887_v34, %v670_v23  ;;  %v675_v38 = vmul.f32 %v2887_v34, %v671_v26 }
 0x35c   :  { %v696_v40 = vmul.f32 %v679_v18, %v672_v35  ;;  %v697_v41 = vmul.f32 %v684_v30, %v673_v36  ;;  %v698_v42 = vmul.f32 %v689_v31, %v674_v37  ;;  %v699_v43 = vmul.f32 %v694_v39, %v675_v38 }
 0x35e   :  { %v721_v47 = vadd.f32 %v708_v32, %v697_v41  ;;  %v722_v27 = vadd.f32 %v713_v33, %v698_v42  ;;  %v720_v49 = vadd.f32 %v703_v7, %v696_v40  ;;  %v723_v51 = vadd.f32 %v718_v44, %v699_v43  ;;  %v922_v44 = vpop.permute.xlu0 %921 }
 0x360   :  { %v2271_v52 = vmul.f32 -1.442695, %v721_v47  ;;  %v2272_v53 = vmul.f32 -1.442695, %v722_v27  ;;  %v2270_v54 = vmul.f32 -1.442695, %v720_v49 }
 0x361   :  { %v2273_v55 = vmul.f32 -1.442695, %v723_v51 }
 0x362   :  { %2888 = vpow2.f32 %v2271_v52 }
 0x363   :  { %2890 = vpow2.f32 %v2272_v53 }
 0x364   :  { %2892 = vpow2.f32 %v2270_v54  ;;  %v946_v54 = vpop.permute.xlu1 %945 }
 0x365   :  { %2894 = vpow2.f32 %v2273_v55 }
 0x36c   :  { %v2889_v56 = vpop.eup %2888 }
 0x36d   :  { %v2891_v57 = vpop.eup %2890  ;;  %v737_v58 = vadd.f32 1.0, %v2889_v56 }
 0x36e   :  { %v2893_v59 = vpop.eup %2892  ;;  %v738_v60 = vadd.f32 1.0, %v2891_v57  ;;  %v927_v57 = vpop.permute.xlu0 %926 }
 0x36f   :  { %2896 = vrcp.f32 %v737_v58  ;;  %v736_v61 = vadd.f32 1.0, %v2893_v59  ;;  %v2895_v62 = vpop.eup %2894  ;;  %v932_v58 = vpop.permute.xlu1 %931 }
 0x370   :  { %2898 = vrcp.f32 %v738_v60  ;;  %v739_v63 = vadd.f32 1.0, %v2895_v62 }
 0x371   :  { %2900 = vrcp.f32 %v736_v61 }
 0x372   :  { %2902 = vrcp.f32 %v739_v63  ;;  %v951_v59 = vpop.permute.xlu0 %950 }
 0x373   :  { %v956_v60 = vpop.permute.xlu1 %955 }
 0x379   :  { %v2897_v0 = vpop.eup %2896 }
 0x37a   :  { %v2899_v1 = vpop.eup %2898  ;;  %v749_v3 = vmul.f32 %v2897_v0, %v721_v47 }
 0x37b   :  { %v2901_v4 = vpop.eup %2900  ;;  %v750_v5 = vmul.f32 %v2899_v1, %v722_v27 }
 0x37c   :  { %v748_v6 = vmul.f32 %v2901_v4, %v720_v49  ;;  %v2903_v10 = vpop.eup %2902 }
 0x37d   :  { %v3409_v8 = vpack.c.bf16 %v750_v5, %v749_v3  ;;  %v3420_v11 = vmul.f32 %v2903_v10, %v723_v51  ;;  %v937_v3 = vpop.permute.xlu0 %936 }
 0x37e   :  { %v3412_v9 = vpack.c.bf16 %v748_v6, %v3376_v48  ;;  %v757_v48 = vld [vmem:[%s3676_s5 + $0x8] sm:$0xff] }
 0x380   :  { %2656 = vmatprep.subr.bf16.mxu1 %v3412_v9  ;;  %2680 = vmatpush1.bf16.msra.mxu0 %v3412_v9 }
 0x381   :  { %2658 = vmatpush3.bf16.msra.mxu1 %v3412_v9  ;;  %2681 = vmatprep.subr.bf16.mxu0 %v3019_v50 }
 0x382   :  { %2660 = vmatprep.subr.bf16.mxu1 %v3409_v8 }
 0x384   :  { %2683 = vmatpush1.bf16.msra.mxu0 %v3409_v8 }
 0x385   :  { %2662 = vmatpush3.bf16.msra.mxu1 %v3409_v8  ;;  %2684 = vmatprep.subr.bf16.mxu0 %v3019_v50 }
 0x386   :  { %2580 = vmatprep.subr.mxu1 %v3420_v11 }
 0x389   :  { %2581 = vmatpush3.msra.mxu1 %v3420_v11 }
 0x38a   :  { %2583 = vmatmul.mubr.msk.f32.vlgmr.msra.gmra.mrb[8].mxu1 %vm775_vm3, %v757_v48  ;;  %2693 = vmatprep.subr.bf16.mxu1 %v3019_v50  ;;  %v961_v48 = vpop.permute.xlu1 %960 }
 0x38b   :  { %2695 = vmatpush1.bf16.msra.mxu1 %v3099_v2  ;;  %2585 = vmatprep.mubr.msk.f32.mxu1 %vm775_vm3, %v758_v12 }
 0x38c   :  { %2696 = vmatprep.subr.bf16.mxu1 %v3019_v50 }
 0x38e   :  { %2586 = vmatmul.mubr.msk.f32.gmra.mrb[10].mxu1 %vm775_vm3, %v759_v13 }
 0x38f   :  { %2698 = vmatpush1.bf16.msra.mxu1 %v3327_v24 }
 0x390   :  { %2699 = vmatprep.subr.bf16.mxu1 %v3019_v50 }
 0x393   :  { %2701 = vmatpush1.bf16.msra.mxu1 %v3329_v25 }
 0x394   :  { %2702 = vmatprep.subr.bf16.mxu1 %v3019_v50 }
 0x397   :  { %2704 = vmatpush1.bf16.msra.mxu1 %v3366_v45 }
 0x398   :  { %2705 = vmatprep.subr.bf16.mxu1 %v3019_v50 }
 0x39b   :  { %2707 = vmatpush1.bf16.msra.mxu1 %v3368_v46 }
 0x39c   :  { %2708 = vmatprep.subr.bf16.mxu1 %v3019_v50 }
 0x39f   :  { %2710 = vmatpush1.bf16.msra.mxu1 %v3412_v9 }
 0x3a0   :  { %2711 = vmatprep.subr.bf16.mxu1 %v3019_v50 }
 0x3a3   :  { %2713 = vmatpush1.bf16.msra.mxu1 %v3409_v8 }
 0x3a4   :  { %2714 = vmatprep.subr.bf16.mxu1 %v3019_v50 }
 0x45d   :  { %v2584_v15 = vpop.f32.mrb[8].mxu1 }
 0x45e   :  { %v883_v16 = vmul.f32 %v2584_v15, %v2584_v15  ;;  %v854_v17 = vpop.f32.mrb[9].mxu1 }
 0x45f   :  { %v873_v18 = vadd.f32 %v2584_v15, %v854_v17  ;;  %v882_v19 = vmul.f32 %v854_v17, %v854_v17 }
 0x461   :  { %v886_v20 = vadd.f32 %v883_v16, %v882_v19  ;;  %v2587_v21 = vpop.f32.mrb[10].mxu1 }
 0x462   :  { %v864_v22 = vpop.f32.mrb[11].mxu1  ;;  %v885_v7 = vmul.f32 %v2587_v21, %v2587_v21 }
 0x463   :  { %v874_v23 = vadd.f32 %v873_v18, %v864_v22  ;;  %v884_v26 = vmul.f32 %v864_v22, %v864_v22 }
 0x465   :  { %v875_v28 = vadd.f32 %v2587_v21, %v874_v23  ;;  %v887_v29 = vadd.f32 %v886_v20, %v884_v26 }
 0x467   :  { %v876_v30 = vrot.slane %v875_v28, 4  ;;  %v888_v31 = vadd.f32 %v887_v29, %v885_v7 }
 0x469   :  { %v877_v32 = vadd.f32 %v876_v30, %v875_v28  ;;  %v889_v33 = vrot.slane %v888_v31, 4 }
 0x46b   :  { %v878_v34 = vrot.slane %v877_v32, 2  ;;  %v890_v35 = vadd.f32 %v889_v33, %v888_v31 }
 0x46d   :  { %v879_v36 = vadd.f32 %v878_v34, %v877_v32  ;;  %v891_v37 = vrot.slane %v890_v35, 2 }
 0x46f   :  { %v880_v38 = vrot.slane %v879_v36, 1  ;;  %v892_v39 = vadd.f32 %v891_v37, %v890_v35 }
 0x471   :  { %v881_v40 = vadd.f32 %v880_v38, %v879_v36  ;;  %v893_v41 = vrot.slane %v892_v39, 1 }
 0x473   :  { %v894_v42 = vadd.f32 %v893_v41, %v892_v39  ;;  %v895_v43 = vmul.f32 0.03125, %v881_v40  ;;  %v51_v40 = vld [vmem:[%s3672_s1] sm:$0xff] }
 0x474   :  { %v999_v41 = vld [vmem:[%s3677_s6] sm:$0xff] }
 0x475   :  { %v896_v47 = vmul.f32 0.03125, %v894_v42  ;;  %v897_v27 = vmul.f32 %v895_v43, %v895_v43  ;;  %v913_v49 = vsub.f32 %v864_v22, %v895_v43  ;;  %v911_v51 = vsub.f32 %v854_v17, %v895_v43  ;;  %v1002_v42 = vld [vmem:[%s3677_s6 + $0x18] sm:$0xff] }
 0x476   :  { %v912_v52 = vsub.f32 %v2584_v15, %v895_v43  ;;  %v914_v53 = vsub.f32 %v2587_v21, %v895_v43  ;;  %v1001_v43 = vld [vmem:[%s3677_s6 + $0x10] sm:$0xff] }
 0x477   :  { %v898_v55 = vsub.f32 %v896_v47, %v897_v27  ;;  %v1003_v47 = vld [vmem:[%s3677_s6 + $0x20] sm:$0xff]  ;;  %v1006_v27 = vld [vmem:[%s3677_s6 + $0x38] sm:$0xff] }
 0x479   :  { %v899_v56 = vadd.f32 1e-05, %v898_v55 }
 0x47b   :  { %2904 = vrsqrt.f32 %v899_v56 }
 0x485   :  { %v2905_v61 = vpop.eup %2904 }
 0x486   :  { %v917_v62 = vmul.f32 %v2905_v61, %v913_v49  ;;  %v915_v63 = vmul.f32 %v2905_v61, %v911_v51  ;;  %v916_v0 = vmul.f32 %v2905_v61, %v912_v52  ;;  %v918_v1 = vmul.f32 %v2905_v61, %v914_v53  ;;  %v1005_v49 = vld [vmem:[%s3677_s6 + $0x30] sm:$0xff]  ;;  %v1252_v51 = vld [vmem:[%s3678_s7 + $0x8] sm:$0xff] }
 0x487   :  { %2306 = vmatprep.mubr.msk.f32.mxu1 %vm1283_vm5, %v1252_v51 }
 0x488   :  { %v941_v4 = vmul.f32 %v932_v58, %v917_v62  ;;  %v939_v5 = vmul.f32 %v922_v44, %v915_v63  ;;  %v940_v6 = vmul.f32 %v927_v57, %v916_v0  ;;  %v942_v10 = vmul.f32 %v937_v3, %v918_v1  ;;  %v1004_v44 = vld [vmem:[%s3677_s6 + $0x28] sm:$0xff] }
 0x48a   :  { %v965_v12 = vadd.f32 %v956_v60, %v941_v4  ;;  %v963_v13 = vadd.f32 %v946_v54, %v939_v5  ;;  %v964_v14 = vadd.f32 %v951_v59, %v940_v6  ;;  %v966_v15 = vadd.f32 %v961_v48, %v942_v10 }
 0x48c   :  { %v2288_v16 = vmul.f32 -1.442695, %v965_v12  ;;  %v2286_v17 = vmul.f32 -1.442695, %v963_v13  ;;  %v2287_v18 = vmul.f32 -1.442695, %v964_v14 }
 0x48d   :  { %v2289_v19 = vmul.f32 -1.442695, %v966_v15 }
 0x48e   :  { %2906 = vpow2.f32 %v2288_v16 }
 0x48f   :  { %2908 = vpow2.f32 %v2286_v17 }
 0x490   :  { %2910 = vpow2.f32 %v2287_v18 }
 0x491   :  { %2912 = vpow2.f32 %v2289_v19 }
 0x498   :  { %v2907_v20 = vpop.eup %2906 }
 0x499   :  { %v2909_v21 = vpop.eup %2908  ;;  %v981_v22 = vadd.f32 1.0, %v2907_v20 }
 0x49a   :  { %v2911_v23 = vpop.eup %2910  ;;  %v979_v26 = vadd.f32 1.0, %v2909_v21 }
 0x49b   :  { %v2913_v7 = vpop.eup %2912  ;;  %2914 = vrcp.f32 %v981_v22  ;;  %v980_v28 = vadd.f32 1.0, %v2911_v23 }
 0x49c   :  { %2916 = vrcp.f32 %v979_v26  ;;  %v982_v29 = vadd.f32 1.0, %v2913_v7 }
 0x49d   :  { %2918 = vrcp.f32 %v980_v28 }
 0x49e   :  { %2920 = vrcp.f32 %v982_v29 }
 0x4a5   :  { %v2915_v30 = vpop.eup %2914 }
 0x4a6   :  { %v2917_v31 = vpop.eup %2916  ;;  %v993_v32 = vmul.f32 %v2915_v30, %v965_v12 }
 0x4a7   :  { %v2919_v33 = vpop.eup %2918  ;;  %v991_v34 = vmul.f32 %v2917_v31, %v963_v13  ;;  %v1179_v31 = vpop.permute.xlu1 %1178 }
 0x4a8   :  { %v992_v35 = vmul.f32 %v2919_v33, %v964_v14  ;;  %v2921_v37 = vpop.eup %2920 }
 0x4a9   :  { %v3458_v36 = vpack.c.bf16 %v991_v34, %v3420_v11  ;;  %v994_v39 = vmul.f32 %v2921_v37, %v966_v15 }
 0x4aa   :  { %v3460_v38 = vpack.c.bf16 %v993_v32, %v992_v35  ;;  %v1174_v32 = vpop.permute.xlu0 %1173 }
 0x4ab   :  { %2686 = vmatpush1.bf16.msra.mxu0 %v3458_v36  ;;  %2716 = vmatpush1.bf16.msra.mxu1 %v3458_v36  ;;  %v3473_v11 = vpack.c.bf16 %v51_v40, %v994_v39  ;;  %v1203_v35 = vpop.permute.xlu1 %1202 }
 0x4ac   :  { %2687 = vmatprep.subr.bf16.mxu0 %v3019_v50  ;;  %2717 = vmatprep.subr.bf16.mxu1 %v3019_v50 }
 0x4ae   :  { %v1198_v37 = vpop.permute.xlu0 %1197 }
 0x4af   :  { %2689 = vmatpush1.bf16.msra.mxu0 %v3460_v38  ;;  %2719 = vmatpush1.bf16.msra.mxu1 %v3460_v38  ;;  %v1189_v39 = vpop.permute.xlu1 %1188 }
 0x4b0   :  { %2690 = vmatprep.subr.bf16.mxu0 %v3019_v50  ;;  %2720 = vmatprep.subr.bf16.mxu1 %v3019_v50 }
 0x4b2   :  { %v1184_v40 = vpop.permute.xlu0 %1183 }
 0x4b3   :  { %2692 = vmatpush1.bf16.msra.mxu0 %v3473_v11  ;;  %2722 = vmatpush1.bf16.msra.mxu1 %v3473_v11 }
 0x4b4   :  { %2729 = vmatprep.subr.bf16.mxu0 %v3019_v50  ;;  %2723 = vmatprep.subr.bf16.mxu1 %v3019_v50 }
 0x4b6   :  { %1105 = vmatmul.mubr.f32.vlgmr.msra.gmra.mrb[4].mxu0 %v999_v41 }
 0x4b7   :  { %2731 = vmatpush1.bf16.msra.mxu0 %v3099_v2  ;;  %2291 = vmatprep.mubr.msk.f32.mxu0 %vm1027_vm4, %v1002_v42 }
 0x4b8   :  { %2732 = vmatprep.subr.bf16.mxu0 %v3019_v50 }
 0x4ba   :  { %1110 = vmatmul.mubr.f32.gmra.mrb[6].mxu0 %v1001_v43 }
 0x4bb   :  { %2734 = vmatpush1.bf16.msra.mxu0 %v3327_v24  ;;  %2292 = vmatprep.mubr.msk.f32.mxu0 %vm1027_vm4, %v1004_v44 }
 0x4bc   :  { %2735 = vmatprep.subr.bf16.mxu0 %v3019_v50 }
 0x4be   :  { %1115 = vmatmul.mubr.f32.gmra.mrb[8].mxu0 %v1003_v47 }
 0x4bf   :  { %2737 = vmatpush1.bf16.msra.mxu0 %v3329_v25  ;;  %2293 = vmatprep.mubr.msk.f32.mxu0 %vm1027_vm4, %v1006_v27 }
 0x4c0   :  { %2738 = vmatprep.subr.bf16.mxu0 %v3019_v50 }
 0x4c2   :  { %1120 = vmatmul.mubr.f32.gmra.mrb[10].mxu0 %v1005_v49 }
 0x4c3   :  { %2740 = vmatpush1.bf16.msra.mxu0 %v3366_v45 }
 0x4c4   :  { %2741 = vmatprep.subr.bf16.mxu0 %v3019_v50 }
 0x4c7   :  { %2743 = vmatpush1.bf16.msra.mxu0 %v3368_v46 }
 0x4c8   :  { %2744 = vmatprep.subr.bf16.mxu0 %v3019_v50 }
 0x4cb   :  { %2746 = vmatpush1.bf16.msra.mxu0 %v3412_v9 }
 0x4cc   :  { %2747 = vmatprep.subr.bf16.mxu0 %v3019_v50 }
 0x4cf   :  { %2749 = vmatpush1.bf16.msra.mxu0 %v3409_v8 }
 0x4d0   :  { %2750 = vmatprep.subr.bf16.mxu0 %v3019_v50 }
 0x4d3   :  { %2752 = vmatpush1.bf16.msra.mxu0 %v3458_v36 }
 0x4d4   :  { %2753 = vmatprep.subr.bf16.mxu0 %v3019_v50 }
 0x4d7   :  { %2755 = vmatpush1.bf16.msra.mxu0 %v3460_v38 }
 0x4d8   :  { %2756 = vmatprep.subr.bf16.mxu0 %v3019_v50 }
 0x4db   :  { %2758 = vmatpush1.bf16.msra.mxu0 %v3473_v11 }
 0x4dc   :  { %2759 = vmatprep.subr.bf16.mxu0 %v3019_v50 }
 0x589   :  { %v1106_v52 = vpop.f32.mrb[4].mxu0 }
 0x58a   :  { %v1108_v53 = vpop.f32.mrb[5].mxu0  ;;  %v1134_v55 = vmul.f32 %v1106_v52, %v1106_v52 }
 0x58b   :  { %v1213_v53 = vpop.permute.xlu1 %1212 }
 0x58d   :  { %v1111_v54 = vpop.f32.mrb[6].mxu0 }
 0x58e   :  { %v1125_v56 = vadd.f32 %v1111_v54, %v1106_v52  ;;  %v1135_v57 = vmul.f32 %v1111_v54, %v1111_v54  ;;  %v1113_v58 = vpop.f32.mrb[7].mxu0 }
 0x590   :  { %v1138_v59 = vadd.f32 %v1135_v57, %v1134_v55 }
 0x591   :  { %v1116_v60 = vpop.f32.mrb[8].mxu0 }
 0x592   :  { %v1126_v61 = vadd.f32 %v1125_v56, %v1116_v60  ;;  %v1136_v62 = vmul.f32 %v1116_v60, %v1116_v60  ;;  %v1118_v63 = vpop.f32.mrb[9].mxu0 }
 0x594   :  { %v1139_v0 = vadd.f32 %v1138_v59, %v1136_v62 }
 0x595   :  { %v1121_v1 = vpop.f32.mrb[10].mxu0 }
 0x596   :  { %v1127_v3 = vadd.f32 %v1126_v61, %v1121_v1  ;;  %v1137_v4 = vmul.f32 %v1121_v1, %v1121_v1  ;;  %v1123_v5 = vpop.f32.mrb[11].mxu0 }
 0x598   :  { %v1128_v6 = vrot.slane %v1127_v3, 4  ;;  %v1140_v10 = vadd.f32 %v1139_v0, %v1137_v4 }
 0x59a   :  { %v1129_v48 = vadd.f32 %v1128_v6, %v1127_v3  ;;  %v1141_v12 = vrot.slane %v1140_v10, 4 }
 0x59c   :  { %v1130_v13 = vrot.slane %v1129_v48, 2  ;;  %v1142_v14 = vadd.f32 %v1141_v12, %v1140_v10 }
 0x59e   :  { %v1131_v15 = vadd.f32 %v1130_v13, %v1129_v48  ;;  %v1143_v16 = vrot.slane %v1142_v14, 2 }
 0x5a0   :  { %v1132_v17 = vrot.slane %v1131_v15, 1  ;;  %v1144_v18 = vadd.f32 %v1143_v16, %v1142_v14 }
 0x5a2   :  { %v1133_v19 = vadd.f32 %v1132_v17, %v1131_v15  ;;  %v1145_v20 = vrot.slane %v1144_v18, 1 }
 0x5a4   :  { %v1146_v21 = vadd.f32 %v1145_v20, %v1144_v18  ;;  %v1147_v22 = vmul.f32 0.03125, %v1133_v19 }
 0x5a6   :  { %v1148_v23 = vmul.f32 0.03125, %v1146_v21  ;;  %v1149_v26 = vmul.f32 %v1147_v22, %v1147_v22  ;;  %v1166_v7 = vsub.f32 %v1121_v1, %v1147_v22  ;;  %v1163_v28 = vsub.f32 %v1106_v52, %v1147_v22  ;;  %v1251_v21 = vld [vmem:[%s3678_s7] sm:$0xff] }
 0x5a7   :  { %v1164_v29 = vsub.f32 %v1111_v54, %v1147_v22  ;;  %v1165_v30 = vsub.f32 %v1116_v60, %v1147_v22  ;;  %v1208_v54 = vpop.permute.xlu0 %1207  ;;  %v1254_v22 = vld [vmem:[%s3678_s7 + $0x18] sm:$0xff] }
 0x5a8   :  { %v1150_v33 = vsub.f32 %v1148_v23, %v1149_v26  ;;  %v1253_v23 = vld [vmem:[%s3678_s7 + $0x10] sm:$0xff]  ;;  %v1256_v26 = vld [vmem:[%s3678_s7 + $0x28] sm:$0xff] }
 0x5aa   :  { %v1151_v34 = vadd.f32 1e-05, %v1150_v33 }
 0x5ac   :  { %2922 = vrsqrt.f32 %v1151_v34 }
 0x5b6   :  { %v2923_v41 = vpop.eup %2922 }
 0x5b7   :  { %v1170_v42 = vmul.f32 %v2923_v41, %v1166_v7  ;;  %v1167_v43 = vmul.f32 %v2923_v41, %v1163_v28  ;;  %v1168_v44 = vmul.f32 %v2923_v41, %v1164_v29  ;;  %v1169_v47 = vmul.f32 %v2923_v41, %v1165_v30  ;;  %v1255_v7 = vld [vmem:[%s3678_s7 + $0x20] sm:$0xff]  ;;  %v1258_v28 = vld [vmem:[%s3678_s7 + $0x38] sm:$0xff]  ;;  %v1257_v29 = vld [vmem:[%s3678_s7 + $0x30] sm:$0xff] }
 0x5b8   :  { %v1508_v30 = vld [vmem:[%s3679_s8 + $0x8] sm:$0xff] }
 0x5b9   :  { %v1194_v27 = vmul.f32 %v1189_v39, %v1170_v42  ;;  %v1191_v49 = vmul.f32 %v1174_v32, %v1167_v43  ;;  %v1192_v51 = vmul.f32 %v1179_v31, %v1168_v44  ;;  %v1193_v52 = vmul.f32 %v1184_v40, %v1169_v47  ;;  %2322 = vmatprep.mubr.msk.f32.mxu0 %vm1543_vm6, %v1508_v30 }
 0x5bb   :  { %v1218_v55 = vadd.f32 %v1213_v53, %v1194_v27  ;;  %v1215_v56 = vadd.f32 %v1198_v37, %v1191_v49  ;;  %v1216_v57 = vadd.f32 %v1203_v35, %v1192_v51  ;;  %v1217_v58 = vadd.f32 %v1208_v54, %v1193_v52 }
 0x5bd   :  { %v2305_v59 = vmul.f32 -1.442695, %v1218_v55  ;;  %v2302_v60 = vmul.f32 -1.442695, %v1215_v56  ;;  %v2303_v61 = vmul.f32 -1.442695, %v1216_v57 }
 0x5be   :  { %v2304_v62 = vmul.f32 -1.442695, %v1217_v58 }
 0x5bf   :  { %2924 = vpow2.f32 %v2305_v59 }
 0x5c0   :  { %2926 = vpow2.f32 %v2302_v60 }
 0x5c1   :  { %2928 = vpow2.f32 %v2303_v61 }
 0x5c2   :  { %2930 = vpow2.f32 %v2304_v62 }
 0x5c9   :  { %v2925_v63 = vpop.eup %2924 }
 0x5ca   :  { %v2927_v0 = vpop.eup %2926  ;;  %v1234_v1 = vadd.f32 1.0, %v2925_v63 }
 0x5cb   :  { %v2929_v3 = vpop.eup %2928  ;;  %v1231_v4 = vadd.f32 1.0, %v2927_v0 }
 0x5cc   :  { %v2931_v5 = vpop.eup %2930  ;;  %2932 = vrcp.f32 %v1234_v1  ;;  %v1232_v6 = vadd.f32 1.0, %v2929_v3 }
 0x5cd   :  { %2934 = vrcp.f32 %v1231_v4  ;;  %v1233_v10 = vadd.f32 1.0, %v2931_v5 }
 0x5ce   :  { %2936 = vrcp.f32 %v1232_v6 }
 0x5cf   :  { %2938 = vrcp.f32 %v1233_v10 }
 0x5d6   :  { %v2933_v48 = vpop.eup %2932 }
 0x5d7   :  { %v2935_v12 = vpop.eup %2934  ;;  %v1246_v15 = vmul.f32 %v2933_v48, %v1218_v55 }
 0x5d8   :  { %v2937_v13 = vpop.eup %2936  ;;  %v1243_v14 = vmul.f32 %v2935_v12, %v1215_v56 }
 0x5d9   :  { %v2939_v16 = vpop.eup %2938  ;;  %v1244_v17 = vmul.f32 %v2937_v13, %v1216_v57  ;;  %v1435_v13 = vpop.permute.xlu1 %1434 }
 0x5da   :  { %v1245_v18 = vmul.f32 %v2939_v16, %v1217_v58 }
 0x5db   :  { %v3527_v19 = vpack.c.bf16 %v1244_v17, %v1243_v14  ;;  %v1430_v14 = vpop.permute.xlu0 %1429 }
 0x5dc   :  { %v3529_v20 = vpack.c.bf16 %v1246_v15, %v1245_v18 }
 0x5dd   :  { %2725 = vmatpush1.bf16.msra.mxu1 %v3527_v19  ;;  %2761 = vmatpush1.bf16.msra.mxu0 %v3527_v19  ;;  %v1459_v17 = vpop.permute.xlu1 %1458 }
 0x5de   :  { %2726 = vmatprep.subr.bf16.mxu1 %v3019_v50  ;;  %2762 = vmatprep.subr.bf16.mxu0 %v3019_v50 }
 0x5df   :  { %v1454_v18 = vpop.permute.xlu0 %1453 }
 0x5e1   :  { %2728 = vmatpush1.bf16.msra.mxu1 %v3529_v20  ;;  %2764 = vmatpush1.bf16.msra.mxu0 %v3529_v20 }
 0x5e2   :  { %2772 = vmatprep.subr.bf16.mxu1 %v3460_v38  ;;  %2765 = vmatprep.subr.bf16.mxu0 %v3019_v50 }
 0x5e4   :  { %1361 = vmatmul.mubr.f32.vlgmr.msra.gmra.mrb[12].mxu1 %v1251_v21  ;;  %v1445_v21 = vpop.permute.xlu1 %1444 }
 0x5e5   :  { %2774 = vmatpush3.bf16.msra.mxu1 %v3099_v2  ;;  %2307 = vmatprep.mubr.msk.f32.mxu1 %vm1283_vm5, %v1254_v22  ;;  %v1440_v22 = vpop.permute.xlu0 %1439 }
 0x5e6   :  { %2776 = vmatprep.subr.bf16.mxu1 %v3473_v11 }
 0x5e8   :  { %1366 = vmatmul.mubr.f32.gmra.mrb[14].mxu1 %v1253_v23 }
 0x5e9   :  { %2778 = vmatpush3.bf16.msra.mxu1 %v3327_v24  ;;  %2308 = vmatprep.mubr.msk.f32.mxu1 %vm1283_vm5, %v1256_v26 }
 0x5ea   :  { %2780 = vmatprep.subr.bf16.mxu1 %v3527_v19 }
 0x5ec   :  { %1371 = vmatmul.mubr.f32.gmra.mrb[16].mxu1 %v1255_v7 }
 0x5ed   :  { %2782 = vmatpush3.bf16.msra.mxu1 %v3329_v25  ;;  %2309 = vmatprep.mubr.msk.f32.mxu1 %vm1283_vm5, %v1258_v28 }
 0x5ee   :  { %2784 = vmatprep.subr.bf16.mxu1 %v3529_v20 }
 0x5f0   :  { %1376 = vmatmul.mubr.f32.gmra.mrb[18].mxu1 %v1257_v29 }
 0x5f1   :  { %2786 = vmatpush3.bf16.msra.mxu1 %v3366_v45 }
 0x6b7   :  { %v1362_v31 = vpop.f32.mrb[12].mxu1 }
 0x6b8   :  { %v1364_v32 = vpop.f32.mrb[13].mxu1  ;;  %v1390_v34 = vmul.f32 %v1362_v31, %v1362_v31 }
 0x6bb   :  { %v1367_v33 = vpop.f32.mrb[14].mxu1 }
 0x6bc   :  { %v1381_v35 = vadd.f32 %v1367_v33, %v1362_v31  ;;  %v1391_v37 = vmul.f32 %v1367_v33, %v1367_v33  ;;  %v1369_v39 = vpop.f32.mrb[15].mxu1 }
 0x6be   :  { %v1394_v40 = vadd.f32 %v1391_v37, %v1390_v34 }
 0x6bf   :  { %v1372_v41 = vpop.f32.mrb[16].mxu1 }
 0x6c0   :  { %v1382_v42 = vadd.f32 %v1381_v35, %v1372_v41  ;;  %v1392_v43 = vmul.f32 %v1372_v41, %v1372_v41  ;;  %v1374_v44 = vpop.f32.mrb[17].mxu1  ;;  %v1464_v35 = vpop.permute.xlu0 %1463 }
 0x6c2   :  { %v1395_v47 = vadd.f32 %v1394_v40, %v1392_v43 }
 0x6c3   :  { %v1377_v27 = vpop.f32.mrb[18].mxu1 }
 0x6c4   :  { %v1383_v49 = vadd.f32 %v1382_v42, %v1377_v27  ;;  %v1393_v51 = vmul.f32 %v1377_v27, %v1377_v27  ;;  %v1379_v52 = vpop.f32.mrb[19].mxu1 }
 0x6c6   :  { %v1384_v53 = vrot.slane %v1383_v49, 4  ;;  %v1396_v54 = vadd.f32 %v1395_v47, %v1393_v51 }
 0x6c8   :  { %v1385_v55 = vadd.f32 %v1384_v53, %v1383_v49  ;;  %v1397_v56 = vrot.slane %v1396_v54, 4 }
 0x6ca   :  { %v1386_v57 = vrot.slane %v1385_v55, 2  ;;  %v1398_v58 = vadd.f32 %v1397_v56, %v1396_v54 }
 0x6cc   :  { %v1387_v59 = vadd.f32 %v1386_v57, %v1385_v55  ;;  %v1399_v60 = vrot.slane %v1398_v58, 2 }
 0x6ce   :  { %v1388_v61 = vrot.slane %v1387_v59, 1  ;;  %v1400_v62 = vadd.f32 %v1399_v60, %v1398_v58 }
 0x6d0   :  { %v1389_v63 = vadd.f32 %v1388_v61, %v1387_v59  ;;  %v1401_v0 = vrot.slane %v1400_v62, 1 }
 0x6d2   :  { %v1402_v1 = vadd.f32 %v1401_v0, %v1400_v62  ;;  %v1403_v3 = vmul.f32 0.03125, %v1389_v63 }
 0x6d4   :  { %v1404_v4 = vmul.f32 0.03125, %v1402_v1  ;;  %v1405_v5 = vmul.f32 %v1403_v3, %v1403_v3  ;;  %v1422_v6 = vsub.f32 %v1377_v27, %v1403_v3  ;;  %v1419_v10 = vsub.f32 %v1362_v31, %v1403_v3 }
 0x6d5   :  { %v1420_v48 = vsub.f32 %v1367_v33, %v1403_v3  ;;  %v1421_v12 = vsub.f32 %v1372_v41, %v1403_v3  ;;  %v1469_v33 = vpop.permute.xlu1 %1468 }
 0x6d6   :  { %v1406_v15 = vsub.f32 %v1404_v4, %v1405_v5  ;;  %v1507_v4 = vld [vmem:[%s3679_s8] sm:$0xff]  ;;  %v1510_v5 = vld [vmem:[%s3679_s8 + $0x18] sm:$0xff] }
 0x6d8   :  { %v1407_v16 = vadd.f32 1e-05, %v1406_v15 }
 0x6da   :  { %2940 = vrsqrt.f32 %v1407_v16 }
 0x6e4   :  { %v2941_v23 = vpop.eup %2940 }
 0x6e5   :  { %v1426_v26 = vmul.f32 %v2941_v23, %v1422_v6  ;;  %v1423_v7 = vmul.f32 %v2941_v23, %v1419_v10  ;;  %v1424_v28 = vmul.f32 %v2941_v23, %v1420_v48  ;;  %v1425_v29 = vmul.f32 %v2941_v23, %v1421_v12  ;;  %v1512_v6 = vld [vmem:[%s3679_s8 + $0x28] sm:$0xff] }
 0x6e7   :  { %v1450_v30 = vmul.f32 %v1445_v21, %v1426_v26  ;;  %v1447_v32 = vmul.f32 %v1430_v14, %v1423_v7  ;;  %v1448_v34 = vmul.f32 %v1435_v13, %v1424_v28  ;;  %v1449_v31 = vmul.f32 %v1440_v22, %v1425_v29 }
 0x6e9   :  { %v1471_v37 = vadd.f32 %v1454_v18, %v1447_v32  ;;  %v1472_v39 = vadd.f32 %v1459_v17, %v1448_v34  ;;  %v1473_v40 = vadd.f32 %v1464_v35, %v1449_v31  ;;  %v1474_v41 = vadd.f32 %v1469_v33, %v1450_v30 }
 0x6eb   :  { %v2318_v42 = vmul.f32 -1.442695, %v1471_v37  ;;  %v2319_v43 = vmul.f32 -1.442695, %v1472_v39  ;;  %v2320_v44 = vmul.f32 -1.442695, %v1473_v40 }
 0x6ec   :  { %v2321_v47 = vmul.f32 -1.442695, %v1474_v41 }
 0x6ed   :  { %2942 = vpow2.f32 %v2318_v42 }
 0x6ee   :  { %2944 = vpow2.f32 %v2319_v43 }
 0x6ef   :  { %2946 = vpow2.f32 %v2320_v44 }
 0x6f0   :  { %2948 = vpow2.f32 %v2321_v47 }
 0x6f7   :  { %v2943_v27 = vpop.eup %2942 }
 0x6f8   :  { %v2945_v49 = vpop.eup %2944  ;;  %v1487_v51 = vadd.f32 1.0, %v2943_v27 }
 0x6f9   :  { %v2947_v52 = vpop.eup %2946  ;;  %v1488_v53 = vadd.f32 1.0, %v2945_v49  ;;  %v1695_v49 = vpop.permute.xlu1 %1694 }
 0x6fa   :  { %v2949_v54 = vpop.eup %2948  ;;  %2950 = vrcp.f32 %v1487_v51  ;;  %v1489_v55 = vadd.f32 1.0, %v2947_v52  ;;  %v1690_v51 = vpop.permute.xlu0 %1689 }
 0x6fb   :  { %2952 = vrcp.f32 %v1488_v53  ;;  %v1490_v56 = vadd.f32 1.0, %v2949_v54 }
 0x6fc   :  { %2954 = vrcp.f32 %v1489_v55 }
 0x6fd   :  { %2956 = vrcp.f32 %v1490_v56  ;;  %v1719_v54 = vpop.permute.xlu1 %1718 }
 0x6fe   :  { %v1714_v55 = vpop.permute.xlu0 %1713 }
 0x701   :  { %v1705_v56 = vpop.permute.xlu1 %1704 }
 0x704   :  { %v2951_v57 = vpop.eup %2950 }
 0x705   :  { %v2953_v58 = vpop.eup %2952  ;;  %v1499_v59 = vmul.f32 %v2951_v57, %v1471_v37  ;;  %v1700_v57 = vpop.permute.xlu0 %1699 }
 0x706   :  { %v2955_v60 = vpop.eup %2954  ;;  %v1500_v61 = vmul.f32 %v2953_v58, %v1472_v39 }
 0x707   :  { %v2957_v62 = vpop.eup %2956  ;;  %v1501_v63 = vmul.f32 %v2955_v60, %v1473_v40 }
 0x708   :  { %v2766_v0 = vpack.c.bf16 %v1500_v61, %v1499_v59  ;;  %v1502_v1 = vmul.f32 %v2957_v62, %v1474_v41 }
 0x70a   :  { %2767 = vmatpush1.bf16.msra.mxu0 %v2766_v0  ;;  %2788 = vmatprep.subr.bf16.mxu1 %v2766_v0  ;;  %v2769_v3 = vpack.c.bf16 %v1502_v1, %v1501_v63 }
 0x70b   :  { %2790 = vmatpush3.bf16.msra.mxu1 %v3368_v46  ;;  %2768 = vmatprep.subr.bf16.mxu0 %v3019_v50  ;;  %v1509_v50 = vld [vmem:[%s3679_s8 + $0x10] sm:$0xff] }
 0x70c   :  { %2792 = vmatprep.subr.bf16.mxu1 %v2769_v3 }
 0x70e   :  { %2770 = vmatpush1.bf16.msra.mxu0 %v2769_v3 }
 0x70f   :  { %2794 = vmatpush3.bf16.msra.mxu1 %v3412_v9  ;;  %2804 = vmatprep.subr.bf16.mxu0 %v3460_v38  ;;  %v1514_v38 = vld [vmem:[%s3679_s8 + $0x38] sm:$0xff] }
 0x711   :  { %1621 = vmatmul.mubr.f32.vlgmr.msra.gmra.mrb[12].mxu0 %v1507_v4  ;;  %v1729_v4 = vpop.permute.xlu1 %1728 }
 0x712   :  { %2806 = vmatpush3.bf16.msra.mxu0 %v3099_v2  ;;  %2323 = vmatprep.mubr.msk.f32.mxu0 %vm1543_vm6, %v1510_v5  ;;  %v1511_v2 = vld [vmem:[%s3679_s8 + $0x20] sm:$0xff]  ;;  %v1724_v5 = vpop.permute.xlu0 %1723 }
 0x713   :  { %2808 = vmatprep.subr.bf16.mxu0 %v3473_v11 }
 0x715   :  { %1626 = vmatmul.mubr.f32.gmra.mrb[14].mxu0 %v1509_v50 }
 0x716   :  { %2810 = vmatpush3.bf16.msra.mxu0 %v3327_v24  ;;  %2324 = vmatprep.mubr.msk.f32.mxu0 %vm1543_vm6, %v1512_v6  ;;  %v1513_v24 = vld [vmem:[%s3679_s8 + $0x30] sm:$0xff] }
 0x717   :  { %2812 = vmatprep.subr.bf16.mxu0 %v3527_v19 }
 0x719   :  { %1631 = vmatmul.mubr.f32.gmra.mrb[16].mxu0 %v1511_v2 }
 0x71a   :  { %2814 = vmatpush3.bf16.msra.mxu0 %v3329_v25  ;;  %2325 = vmatprep.mubr.msk.f32.mxu0 %vm1543_vm6, %v1514_v38  ;;  %v1768_v25 = vld [vmem:[%s3680_s9 + $0x8] sm:$0xff] }
 0x71b   :  { %2816 = vmatprep.subr.bf16.mxu0 %v3529_v20  ;;  %1871 = vmatprep.mubr.f32.mxu1 %v1768_v25 }
 0x71d   :  { %1636 = vmatmul.mubr.f32.gmra.mrb[18].mxu0 %v1513_v24 }
 0x71e   :  { %2818 = vmatpush3.bf16.msra.mxu0 %v3366_v45 }
 0x71f   :  { %2820 = vmatprep.subr.bf16.mxu0 %v2766_v0 }
 0x722   :  { %2822 = vmatpush3.bf16.msra.mxu0 %v3368_v46 }
 0x723   :  { %2824 = vmatprep.subr.bf16.mxu0 %v2769_v3 }
 0x726   :  { %2826 = vmatpush3.bf16.msra.mxu0 %v3412_v9 }
 0x7e4   :  { %v1622_v11 = vpop.f32.mrb[12].mxu0 }
 0x7e5   :  { %v1624_v19 = vpop.f32.mrb[13].mxu0  ;;  %v1650_v48 = vmul.f32 %v1622_v11, %v1622_v11 }
 0x7e8   :  { %v1627_v10 = vpop.f32.mrb[14].mxu0 }
 0x7e9   :  { %v1641_v12 = vadd.f32 %v1627_v10, %v1622_v11  ;;  %v1651_v20 = vmul.f32 %v1627_v10, %v1627_v10  ;;  %v1629_v13 = vpop.f32.mrb[15].mxu0 }
 0x7eb   :  { %v1654_v14 = vadd.f32 %v1651_v20, %v1650_v48 }
 0x7ec   :  { %v1632_v45 = vpop.f32.mrb[16].mxu0 }
 0x7ed   :  { %v1642_v15 = vadd.f32 %v1641_v12, %v1632_v45  ;;  %v1652_v16 = vmul.f32 %v1632_v45, %v1632_v45  ;;  %v1634_v46 = vpop.f32.mrb[17].mxu0 }
 0x7ef   :  { %v1655_v17 = vadd.f32 %v1654_v14, %v1652_v16 }
 0x7f0   :  { %v1637_v18 = vpop.f32.mrb[18].mxu0 }
 0x7f1   :  { %v1643_v9 = vadd.f32 %v1642_v15, %v1637_v18  ;;  %v1653_v21 = vmul.f32 %v1637_v18, %v1637_v18  ;;  %v1639_v22 = vpop.f32.mrb[19].mxu0 }
 0x7f3   :  { %v1644_v23 = vrot.slane %v1643_v9, 4  ;;  %v1656_v26 = vadd.f32 %v1655_v17, %v1653_v21 }
 0x7f5   :  { %v1645_v7 = vadd.f32 %v1644_v23, %v1643_v9  ;;  %v1657_v28 = vrot.slane %v1656_v26, 4 }
 0x7f7   :  { %v1646_v29 = vrot.slane %v1645_v7, 2  ;;  %v1658_v30 = vadd.f32 %v1657_v28, %v1656_v26  ;;  %v1767_v28 = vld [vmem:[%s3680_s9] sm:$0xff] }
 0x7f9   :  { %v1647_v32 = vadd.f32 %v1646_v29, %v1645_v7  ;;  %v1659_v34 = vrot.slane %v1658_v30, 2  ;;  %v1770_v29 = vld [vmem:[%s3680_s9 + $0x18] sm:$0xff] }
 0x7fb   :  { %v1648_v31 = vrot.slane %v1647_v32, 1  ;;  %v1660_v33 = vadd.f32 %v1659_v34, %v1658_v30  ;;  %v1772_v30 = vld [vmem:[%s3680_s9 + $0x28] sm:$0xff]  ;;  %v1773_v34 = vld [vmem:[%s3680_s9 + $0x30] sm:$0xff] }
 0x7fd   :  { %v1649_v35 = vadd.f32 %v1648_v31, %v1647_v32  ;;  %v1661_v37 = vrot.slane %v1660_v33, 1  ;;  %v1774_v32 = vld [vmem:[%s3680_s9 + $0x38] sm:$0xff]  ;;  %v2019_v31 = vld [vmem:[%s3683_s12 + $0x8] sm:$0xff] }
 0x7fe   :  { %2130 = vmatprep.mubr.f32.mxu0 %v2019_v31 }
 0x7ff   :  { %v1662_v39 = vadd.f32 %v1661_v37, %v1660_v33  ;;  %v1663_v40 = vmul.f32 0.03125, %v1649_v35  ;;  %v2018_v33 = vld [vmem:[%s3683_s12] sm:$0xff]  ;;  %v2020_v35 = vld [vmem:[%s3683_s12 + $0x10] sm:$0xff] }
 0x800   :  { %v2022_v37 = vld [vmem:[%s3683_s12 + $0x20] sm:$0xff] }
 0x801   :  { %v1664_v41 = vmul.f32 0.03125, %v1662_v39  ;;  %v1665_v42 = vmul.f32 %v1663_v40, %v1663_v40  ;;  %v1682_v43 = vsub.f32 %v1637_v18, %v1663_v40  ;;  %v1679_v44 = vsub.f32 %v1622_v11, %v1663_v40  ;;  %v2021_v39 = vld [vmem:[%s3683_s12 + $0x18] sm:$0xff] }
 0x802   :  { %v1680_v47 = vsub.f32 %v1627_v10, %v1663_v40  ;;  %v1681_v27 = vsub.f32 %v1632_v45, %v1663_v40 }
 0x803   :  { %v1666_v52 = vsub.f32 %v1664_v41, %v1665_v42 }
 0x805   :  { %v1667_v53 = vadd.f32 1e-05, %v1666_v52 }
 0x807   :  { %2958 = vrsqrt.f32 %v1667_v53 }
 0x811   :  { %v2959_v58 = vpop.eup %2958 }
 0x812   :  { %v1686_v59 = vmul.f32 %v2959_v58, %v1682_v43  ;;  %v1683_v60 = vmul.f32 %v2959_v58, %v1679_v44  ;;  %v1684_v61 = vmul.f32 %v2959_v58, %v1680_v47  ;;  %v1685_v62 = vmul.f32 %v2959_v58, %v1681_v27 }
 0x814   :  { %v1710_v63 = vmul.f32 %v1705_v56, %v1686_v59  ;;  %v1707_v0 = vmul.f32 %v1690_v51, %v1683_v60  ;;  %v1708_v1 = vmul.f32 %v1695_v49, %v1684_v61  ;;  %v1709_v3 = vmul.f32 %v1700_v57, %v1685_v62 }
 0x816   :  { %v1731_v50 = vadd.f32 %v1714_v55, %v1707_v0  ;;  %v1732_v6 = vadd.f32 %v1719_v54, %v1708_v1  ;;  %v1733_v2 = vadd.f32 %v1724_v5, %v1709_v3  ;;  %v1734_v38 = vadd.f32 %v1729_v4, %v1710_v63 }
 0x818   :  { %v2334_v24 = vmul.f32 -1.442695, %v1731_v50  ;;  %v2335_v25 = vmul.f32 -1.442695, %v1732_v6  ;;  %v2336_v11 = vmul.f32 -1.442695, %v1733_v2 }
 0x819   :  { %v2337_v19 = vmul.f32 -1.442695, %v1734_v38 }
 0x81a   :  { %2960 = vpow2.f32 %v2334_v24 }
 0x81b   :  { %2962 = vpow2.f32 %v2335_v25 }
 0x81c   :  { %2964 = vpow2.f32 %v2336_v11 }
 0x81d   :  { %2966 = vpow2.f32 %v2337_v19 }
 0x824   :  { %v2961_v10 = vpop.eup %2960 }
 0x825   :  { %v2963_v48 = vpop.eup %2962  ;;  %v1747_v12 = vadd.f32 1.0, %v2961_v10 }
 0x826   :  { %v2965_v20 = vpop.eup %2964  ;;  %v1748_v13 = vadd.f32 1.0, %v2963_v48 }
 0x827   :  { %v2967_v14 = vpop.eup %2966  ;;  %2968 = vrcp.f32 %v1747_v12  ;;  %v1749_v45 = vadd.f32 1.0, %v2965_v20 }
 0x828   :  { %2970 = vrcp.f32 %v1748_v13  ;;  %v1750_v15 = vadd.f32 1.0, %v2967_v14 }
 0x829   :  { %2972 = vrcp.f32 %v1749_v45 }
 0x82a   :  { %2974 = vrcp.f32 %v1750_v15  ;;  %v1946_v15 = vpop.permute.xlu1 %1945 }
 0x831   :  { %v2969_v16 = vpop.eup %2968 }
 0x832   :  { %v2971_v46 = vpop.eup %2970  ;;  %v1759_v17 = vmul.f32 %v2969_v16, %v1731_v50  ;;  %v1941_v16 = vpop.permute.xlu0 %1940 }
 0x833   :  { %v2973_v18 = vpop.eup %2972  ;;  %v1760_v9 = vmul.f32 %v2971_v46, %v1732_v6 }
 0x834   :  { %v2975_v21 = vpop.eup %2974  ;;  %v1761_v22 = vmul.f32 %v2973_v18, %v1733_v2  ;;  %v1970_v18 = vpop.permute.xlu1 %1969 }
 0x835   :  { %v2795_v23 = vpack.c.bf16 %v1760_v9, %v1759_v17  ;;  %v1762_v26 = vmul.f32 %v2975_v21, %v1734_v38 }
 0x836   :  { %v1965_v9 = vpop.permute.xlu0 %1964 }
 0x837   :  { %2796 = vmatprep.subr.bf16.mxu1 %v2795_v23  ;;  %2828 = vmatprep.subr.bf16.mxu0 %v2795_v23  ;;  %v2799_v7 = vpack.c.bf16 %v1762_v26, %v1761_v22 }
 0x838   :  { %2798 = vmatpush3.bf16.msra.mxu1 %v3409_v8  ;;  %2830 = vmatpush3.bf16.msra.mxu0 %v3409_v8  ;;  %v1769_v8 = vld [vmem:[%s3680_s9 + $0x10] sm:$0xff]  ;;  %v1956_v21 = vpop.permute.xlu1 %1955 }
 0x839   :  { %2800 = vmatprep.subr.bf16.mxu1 %v2799_v7  ;;  %2832 = vmatprep.subr.bf16.mxu0 %v2799_v7 }
 0x83a   :  { %v1951_v22 = vpop.permute.xlu0 %1950 }
 0x83c   :  { %2802 = vmatpush3.bf16.msra.mxu1 %v3458_v36  ;;  %2834 = vmatpush3.bf16.msra.mxu0 %v3458_v36  ;;  %v1771_v36 = vld [vmem:[%s3680_s9 + $0x20] sm:$0xff] }
 0x83e   :  { %v1975_v31 = vpop.permute.xlu0 %1974 }
 0x83f   :  { %1872 = vmatmul.mubr.f32.vlgmr.msra.gmra.mrb[20].mxu1 %v1767_v28  ;;  %2131 = vmatmul.mubr.f32.vlgmr.msra.gmra.mrb[20].mxu0 %v2018_v33 }
 0x840   :  { %1876 = vmatprep.mubr.f32.mxu1 %v1770_v29  ;;  %2135 = vmatprep.mubr.f32.mxu0 %v2022_v37 }
 0x843   :  { %1877 = vmatmul.mubr.f32.gmra.mrb[22].mxu1 %v1769_v8  ;;  %2136 = vmatmul.mubr.f32.gmra.mrb[22].mxu0 %v2021_v39 }
 0x844   :  { %1881 = vmatprep.mubr.f32.mxu1 %v1772_v30 }
 0x847   :  { %1882 = vmatmul.mubr.f32.gmra.mrb[24].mxu1 %v1771_v36 }
 0x848   :  { %1886 = vmatprep.mubr.f32.mxu1 %v1774_v32 }
 0x84b   :  { %1887 = vmatmul.mubr.f32.gmra.mrb[26].mxu1 %v1773_v34  ;;  %v1980_v34 = vpop.permute.xlu1 %1979 }
 0x84c   :  { %2596 = vmatprep.mubr.msk.f32.mxu1 %vm1027_vm4, %v2020_v35 }
 0x912   :  { %v2436_v40 = vpop.f32.mrb[20].mxu1 }
 0x913   :  { %v2437_v41 = vpop.f32.mrb[21].mxu1 }
 0x914   :  { %v2438_v42 = vadd.f32 %v2437_v41, %v2436_v40 }
 0x916   :  { %v2439_v43 = vpop.f32.mrb[22].mxu1  ;;  %v1901_v27 = vmul.f32 %v2438_v42, %v2438_v42 }
 0x917   :  { %v2440_v44 = vpop.f32.mrb[23].mxu1 }
 0x918   :  { %v2441_v47 = vadd.f32 %v2440_v44, %v2439_v43 }
 0x91a   :  { %v1892_v49 = vadd.f32 %v2441_v47, %v2438_v42  ;;  %v1902_v51 = vmul.f32 %v2441_v47, %v2441_v47  ;;  %v2442_v52 = vpop.f32.mrb[24].mxu1 }
 0x91b   :  { %v2443_v53 = vpop.f32.mrb[25].mxu1 }
 0x91c   :  { %v1905_v54 = vadd.f32 %v1902_v51, %v1901_v27  ;;  %v2444_v55 = vadd.f32 %v2443_v53, %v2442_v52 }
 0x91e   :  { %v1893_v56 = vadd.f32 %v2444_v55, %v1892_v49  ;;  %v1903_v57 = vmul.f32 %v2444_v55, %v2444_v55  ;;  %v2445_v58 = vpop.f32.mrb[26].mxu1 }
 0x91f   :  { %v2446_v59 = vpop.f32.mrb[27].mxu1 }
 0x920   :  { %v1906_v60 = vadd.f32 %v1905_v54, %v1903_v57  ;;  %v2447_v61 = vadd.f32 %v2446_v59, %v2445_v58 }
 0x922   :  { %v1894_v62 = vadd.f32 %v2447_v61, %v1893_v56  ;;  %v1904_v63 = vmul.f32 %v2447_v61, %v2447_v61 }
 0x924   :  { %v1895_v0 = vrot.slane %v1894_v62, 4  ;;  %v1907_v1 = vadd.f32 %v1906_v60, %v1904_v63 }
 0x926   :  { %v1896_v3 = vadd.f32 %v1895_v0, %v1894_v62  ;;  %v1908_v4 = vrot.slane %v1907_v1, 4 }
 0x928   :  { %v1897_v5 = vrot.slane %v1896_v3, 2  ;;  %v1909_v50 = vadd.f32 %v1908_v4, %v1907_v1  ;;  %v2023_v1 = vld [vmem:[%s3683_s12 + $0x28] sm:$0xff] }
 0x92a   :  { %v1898_v6 = vadd.f32 %v1897_v5, %v1896_v3  ;;  %v1910_v2 = vrot.slane %v1909_v50, 2  ;;  %v2480_v3 = vpop.f32.mrb[20].mxu0 }
 0x92b   :  { %v2481_v4 = vpop.f32.mrb[21].mxu0 }
 0x92c   :  { %v1899_v38 = vrot.slane %v1898_v6, 1  ;;  %v1911_v24 = vadd.f32 %v1910_v2, %v1909_v50  ;;  %v2482_v5 = vadd.f32 %v2481_v4, %v2480_v3  ;;  %v2483_v50 = vpop.f32.mrb[22].mxu0 }
 0x92e   :  { %v1900_v25 = vadd.f32 %v1899_v38, %v1898_v6  ;;  %v1912_v11 = vrot.slane %v1911_v24, 1  ;;  %v2484_v6 = vpop.f32.mrb[23].mxu0 }
 0x92f   :  { %v2485_v2 = vadd.f32 %v2484_v6, %v2483_v50 }
 0x930   :  { %v1913_v19 = vadd.f32 %v1912_v11, %v1911_v24  ;;  %v1914_v10 = vmul.f32 0.03125, %v1900_v25 }
 0x932   :  { %v1915_v48 = vmul.f32 0.03125, %v1913_v19  ;;  %v1916_v12 = vmul.f32 %v1914_v10, %v1914_v10  ;;  %v1933_v20 = vsub.f32 %v2447_v61, %v1914_v10  ;;  %v1930_v13 = vsub.f32 %v2438_v42, %v1914_v10 }
 0x933   :  { %v1931_v14 = vsub.f32 %v2441_v47, %v1914_v10  ;;  %v1932_v45 = vsub.f32 %v2444_v55, %v1914_v10 }
 0x934   :  { %v1917_v46 = vsub.f32 %v1915_v48, %v1916_v12 }
 0x936   :  { %v1918_v17 = vadd.f32 1e-05, %v1917_v46 }
 0x938   :  { %2976 = vrsqrt.f32 %v1918_v17 }
 0x942   :  { %v2977_v23 = vpop.eup %2976 }
 0x943   :  { %v1937_v26 = vmul.f32 %v2977_v23, %v1933_v20  ;;  %v1934_v7 = vmul.f32 %v2977_v23, %v1930_v13  ;;  %v1935_v28 = vmul.f32 %v2977_v23, %v1931_v14  ;;  %v1936_v29 = vmul.f32 %v2977_v23, %v1932_v45 }
 0x945   :  { %v1961_v8 = vmul.f32 %v1956_v21, %v1937_v26  ;;  %v1958_v30 = vmul.f32 %v1941_v16, %v1934_v7  ;;  %v1959_v36 = vmul.f32 %v1946_v15, %v1935_v28  ;;  %v1960_v32 = vmul.f32 %v1951_v22, %v1936_v29 }
 0x947   :  { %v1982_v33 = vadd.f32 %v1965_v9, %v1958_v30  ;;  %v1983_v35 = vadd.f32 %v1970_v18, %v1959_v36  ;;  %v1984_v37 = vadd.f32 %v1975_v31, %v1960_v32  ;;  %v1985_v39 = vadd.f32 %v1980_v34, %v1961_v8 }
 0x949   :  { %v2346_v40 = vmul.f32 -1.442695, %v1982_v33  ;;  %v2347_v41 = vmul.f32 -1.442695, %v1983_v35  ;;  %v2348_v42 = vmul.f32 -1.442695, %v1984_v37 }
 0x94a   :  { %v2349_v43 = vmul.f32 -1.442695, %v1985_v39 }
 0x94b   :  { %2978 = vpow2.f32 %v2346_v40 }
 0x94c   :  { %2980 = vpow2.f32 %v2347_v41 }
 0x94d   :  { %2982 = vpow2.f32 %v2348_v42 }
 0x94e   :  { %2984 = vpow2.f32 %v2349_v43 }
 0x955   :  { %v2979_v44 = vpop.eup %2978 }
 0x956   :  { %v2981_v47 = vpop.eup %2980  ;;  %v1998_v27 = vadd.f32 1.0, %v2979_v44 }
 0x957   :  { %v2983_v49 = vpop.eup %2982  ;;  %v1999_v51 = vadd.f32 1.0, %v2981_v47 }
 0x958   :  { %v2985_v52 = vpop.eup %2984  ;;  %2986 = vrcp.f32 %v1998_v27  ;;  %v2000_v53 = vadd.f32 1.0, %v2983_v49 }
 0x959   :  { %2988 = vrcp.f32 %v1999_v51  ;;  %v2001_v54 = vadd.f32 1.0, %v2985_v52 }
 0x95a   :  { %2990 = vrcp.f32 %v2000_v53 }
 0x95b   :  { %2992 = vrcp.f32 %v2001_v54 }
 0x962   :  { %v2987_v55 = vpop.eup %2986 }
 0x963   :  { %v2989_v56 = vpop.eup %2988  ;;  %v2010_v57 = vmul.f32 %v2987_v55, %v1982_v33 }
 0x964   :  { %v2991_v58 = vpop.eup %2990  ;;  %v2011_v59 = vmul.f32 %v2989_v56, %v1983_v35 }
 0x965   :  { %v2993_v60 = vpop.eup %2992  ;;  %v2012_v61 = vmul.f32 %v2991_v58, %v1984_v37 }
 0x966   :  { %v2835_v62 = vpack.c.bf16 %v2011_v59, %v2010_v57  ;;  %v2013_v63 = vmul.f32 %v2993_v60, %v1985_v39 }
 0x968   :  { %2836 = vmatprep.subr.bf16.mxu1 %v2835_v62  ;;  %v2839_v0 = vpack.c.bf16 %v2013_v63, %v2012_v61 }
 0x969   :  { %2838 = vmatpush3.bf16.msra.mxu1 %v2835_v62 }
 0x96a   :  { %2840 = vmatprep.subr.bf16.mxu1 %v2839_v0 }
 0x96d   :  { %2842 = vmatpush3.bf16.msra.mxu1 %v2839_v0 }
 0x970   :  { %2597 = vmatmul.mubr.msk.f32.vlgmr.msra.gmra.mrb[28].mxu1 %vm1027_vm4, %v2023_v1 }
 0xa43   :  { %v2598_v38 = vpop.f32.mrb[28].mxu1 }
 0xa44   :  { %v2207_v24 = vpop.f32.mrb[29].mxu1  ;;  %v2213_v25 = vadd.f32 %v2598_v38, %v2485_v2 }
 0xa45   :  { %v2208_v11 = vadd.f32 %v2482_v5, %v2207_v24 }
 0xa46   :  { %2217 = vst [vmem:[#allocation3 + $0x8] sm:$0xff] %v2213_v25 }
 0xa47   :  { %2216 = vst [vmem:[#allocation3] sm:$0xff] %v2208_v11 }
 0xa48   :  { %3005 = shalt.err (!%p3002_p4)
}
 0xa49   :  { %s3006_s18 = scalar_lea.hbm %s3684_s13, 256 }
 0xa4a   :  { %p3007_p5 = scmp.ne.s32.totalorder %s3684_s13, %s3006_s18  ;;  %p3010_p6 = scmp.lt.u32.totalorder %s3006_s18, %s3684_s13 }
 0xa4c   :  { %p3012_p7 = pnand %p3010_p6, %p3007_p5 }
 0xa4e   :  { %3015 = shalt.err (!%p3012_p7)
}
 0xa4f   :  { %s3021_s20 = smov 128   ;;  %s3022_s21 = smov 8  }
 0xa50   :  { %2229 = dma.vmem_to_hbm [thread:$0]  %s2224_s16, 256, %s3684_s13, [#allocation4], %s3021_s20, %s3021_s20, %s3022_s21  }
 0xa51   :  { %3016 = dma.done.wait [#allocation4], 256  }
 0xa52   :  { %3017 = vsyncadd [#allocation4], 4294967040 }
 0xa53   :  { %2233 = vsyncpa [#allocation4], 1 }

</bundles_post_ra>
